<compile_context>
chip_gen: v7x
topology: tpu7x:2x2x1
jax: 0.10.0
libtpu: 0.0.40
codegen_flags: <defaults>
</compile_context>

<pallas_src>
import functools

import jax
import jax.numpy as jnp
from jax import lax
from jax.experimental import pallas as pl
from jax.experimental.pallas import tpu as pltpu


# ---------------------------------------------------------------------------
# Fused kernel: Q/K/V projection + masked softmax attention for ALL batch
# elements and ALL heads in a single invocation (no grid).
# ---------------------------------------------------------------------------
def _cross_attention_kernel(x_ref, w_ref, bvec_ref, len_ref, out_ref, attn_ref,
                            *, heads, scale):
    b, n, dim = out_ref.shape
    n2 = attn_ref.shape[-1]
    dh = dim // heads
    rq, rk = b * n, b * n2

    # One fused projection matmul:
    #   [xq; xk; xv] (b*(n+2*n2), dim) @ [Wq | Wk | Wv] (dim, 3*dim) + [bq|bk|bv]
    proj = (jnp.dot(x_ref[...], w_ref[...], preferred_element_type=jnp.float32)
            + bvec_ref[...])

    # Diagonal blocks; softmax scale folded into q (n x dh muls, not n x n2).
    q = proj[:rq, 0:dim] * jnp.float32(scale)          # (b*n,  dim)
    k = proj[rq:rq + rk, dim:2 * dim]                  # (b*n2, dim)
    v = proj[rq + rk:rq + 2 * rk, 2 * dim:3 * dim]     # (b*n2, dim)

    # Leading-dim splits only (layout-trivial, n and n2 are sublane-aligned).
    q3 = q.reshape(b, n, dim)
    k3 = k.reshape(b, n2, dim)
    v3 = v.reshape(b, n2, dim)

    # Additive mask bias built in-kernel from len_x (SMEM scalars).
    # The torch module only applies the mask when b == 2 (static), mirrored here.
    if b == 2:
        pos = lax.broadcasted_iota(jnp.int32, (1, 1, n2), 2)
        bias = jnp.concatenate(
            [jnp.where(pos < len_ref[i], 0.0, -1e30) for i in range(b)],
            axis=0).astype(jnp.float32)                # (b, 1, n2)
    else:
        bias = jnp.zeros((b, 1, n2), jnp.float32)

    inv_heads = jnp.float32(1.0 / heads)
    attn_acc = jnp.zeros((b, n, n2), jnp.float32)
    head_outs = []
    # Static loop over heads; each step issues ONE batch-batched QK^T and ONE
    # batch-batched PV dot_general (instead of per-(batch, head) tiny matmuls).
    for h in range(heads):
        lo = h * dh
        qh = q3[:, :, lo:lo + dh]                      # (b, n,  dh) static lane slice
        kh = k3[:, :, lo:lo + dh]                      # (b, n2, dh)
        vh = v3[:, :, lo:lo + dh]                      # (b, n2, dh)

        s = jnp.einsum('bid,bjd->bij', qh, kh,
                       preferred_element_type=jnp.float32) + bias   # (b, n, n2)
        m = jnp.max(s, axis=-1, keepdims=True)
        p = jnp.exp(s - m)
        # Exact divide: attn2 is a user-visible output (see review concern).
        attn_h = p / jnp.sum(p, axis=-1, keepdims=True)

        attn_acc = attn_acc + attn_h
        head_outs.append(jnp.einsum('bij,bjd->bid', attn_h, vh,
                                    preferred_element_type=jnp.float32))

    # Lane-dense single stores.
    # TODO(synk): at production dh (>=128) store each head directly into
    # out_ref[:, :, lo:lo+dh] as produced instead of keeping all heads live.
    out_ref[...] = jnp.concatenate(head_outs, axis=-1)
    attn_ref[...] = attn_acc * inv_heads


# ---------------------------------------------------------------------------
# Full forward pass (mirrors CrossAttention.forward)
# ---------------------------------------------------------------------------
def cross_attention(queries, keys, values, len_x, lgt, params, heads):
    del lgt  # unused in the reference forward pass
    b, n, dim = queries.shape
    b2, n2, _ = keys.shape
    assert b == b2
    scale = dim ** (-0.5)  # NOTE: module scales by dim**-0.5 (not dim_head**-0.5)

    # Wrapper-side layout prep (cheap XLA ops): pre-transpose nn.Linear weights
    # to (in, out), lane-concat them, row-stack the three inputs.
    w_cat = jnp.concatenate(
        [params["wq"].T, params["wk"].T, params["wv"].T], axis=1)        # (dim, 3*dim)
    b_cat = jnp.concatenate(
        [params["bq"], params["bk"], params["bv"]]).reshape(1, 3 * dim)  # (1, 3*dim)
    x_stack = jnp.concatenate(
        [queries.reshape(b * n, dim),
         keys.reshape(b * n2, dim),
         values.reshape(b * n2, dim)], axis=0)                           # (b*(n+2*n2), dim)

    vmem = pl.BlockSpec(memory_space=pltpu.MemorySpace.VMEM)
    smem = pl.BlockSpec(memory_space=pltpu.MemorySpace.SMEM)

    # Single kernel invocation, no grid (see header comment for why).
    out, attn2 = pl.pallas_call(
        functools.partial(_cross_attention_kernel, heads=heads, scale=scale),
        out_shape=[
            jax.ShapeDtypeStruct((b, n, dim), jnp.float32),
            jax.ShapeDtypeStruct((b, n, n2), jnp.float32),
        ],
        in_specs=[vmem, vmem, vmem, smem],
        out_specs=[vmem, vmem],
    )(x_stack, w_cat, b_cat, len_x.astype(jnp.int32))

    return out, attn2


# ---------------------------------------------------------------------------
# Pure-JAX reference for a correctness check.
# ---------------------------------------------------------------------------
def cross_attention_ref(queries, keys, values, len_x, params, heads):
    b, n, dim = queries.shape
    b2, n2, _ = keys.shape
    dh = dim // heads
    scale = dim ** (-0.5)
    q = (queries @ params["wq"].T + params["bq"]).reshape(b, n, heads, dh).transpose(0, 2, 1, 3)
    k = (keys @ params["wk"].T + params["bk"]).reshape(b2, n2, heads, dh).transpose(0, 2, 1, 3)
    v = (values @ params["wv"].T + params["bv"]).reshape(b2, n2, heads, dh).transpose(0, 2, 1, 3)
    dots = jnp.einsum("bhid,bhjd->bhij", q, k) * scale
    if b == 2:
        mask = (jnp.arange(n2)[None, :] < len_x[:, None])[:, None, None, :]
        dots = jnp.where(mask, dots, -jnp.inf)
    attn = jax.nn.softmax(dots, axis=-1)
    out = jnp.einsum("bhij,bhjd->bhid", attn, v).transpose(0, 2, 1, 3).reshape(b, n, dim)
    return out, attn.mean(axis=1)


if __name__ == "__main__":
    b, n, n2, dim, heads = 2, 8, 8, 32, 8

    key = jax.random.PRNGKey(0)
    ks = jax.random.split(key, 9)
    bound = 1.0 / (dim ** 0.5)
    params = {
        "wq": jax.random.uniform(ks[0], (dim, dim), jnp.float32, -bound, bound),
        "bq": jax.random.uniform(ks[1], (dim,), jnp.float32, -bound, bound),
        "wk": jax.random.uniform(ks[2], (dim, dim), jnp.float32, -bound, bound),
        "bk": jax.random.uniform(ks[3], (dim,), jnp.float32, -bound, bound),
        "wv": jax.random.uniform(ks[4], (dim, dim), jnp.float32, -bound, bound),
        "bv": jax.random.uniform(ks[5], (dim,), jnp.float32, -bound, bound),
    }

    queries = jax.random.normal(ks[6], (b, n, dim), jnp.float32)
    keys_in = jax.random.normal(ks[7], (b, n2, dim), jnp.float32)
    values = jax.random.normal(ks[8], (b, n2, dim), jnp.float32)
    len_x = jnp.array([5, 8], dtype=jnp.int32)   # valid key lengths per batch
    lgt = jnp.array([n, n], dtype=jnp.int32)     # unused by forward (matches torch)

    out, attn2 = cross_attention(queries, keys_in, values, len_x, lgt, params, heads)
    (out, attn2) = jax.block_until_ready((out, attn2))

    out_ref, attn2_ref = cross_attention_ref(queries, keys_in, values, len_x, params, heads)
    assert out.shape == (b, n, dim) and attn2.shape == (b, n, n2)
    assert jnp.allclose(out, out_ref, atol=2e-3, rtol=2e-3)
    assert jnp.allclose(attn2, attn2_ref, atol=2e-3, rtol=2e-3)

    print("KERNEL_OK")
</pallas_src>

<mosaic_0001>
module attributes {stable_mosaic.version = 11 : i64} {
  func.func @_cross_attention_kernel(%arg0: memref<48x32xf32, #tpu.memory_space<vmem>>, %arg1: memref<32x96xf32, #tpu.memory_space<vmem>>, %arg2: memref<1x96xf32, #tpu.memory_space<vmem>>, %arg3: memref<2xi32, #tpu.memory_space<smem>>, %arg4: memref<2x8x32xf32, #tpu.memory_space<vmem>>, %arg5: memref<2x8x8xf32, #tpu.memory_space<vmem>>) attributes {dimension_semantics = [], scalar_prefetch = 0 : i64, scratch_operands = 0 : i64, tpu.core_type = #tpu.core_type<tc>} {
    %c0 = arith.constant 0 : index
    %c0_0 = arith.constant 0 : index
    %0 = vector.load %arg0[%c0, %c0_0] : memref<48x32xf32, #tpu.memory_space<vmem>>, vector<48x32xf32>
    %c0_1 = arith.constant 0 : index
    %c0_2 = arith.constant 0 : index
    %1 = vector.load %arg1[%c0_1, %c0_2] : memref<32x96xf32, #tpu.memory_space<vmem>>, vector<32x96xf32>
    %cst = arith.constant dense<0.000000e+00> : vector<48x96xf32>
    %2 = tpu.matmul %0, %1, %cst {dimension_numbers = #tpu.dot_dimension_numbers<[1], [0], [0], [1], [0, 0, 1, 1], [], []>} : vector<48x32xf32>, vector<32x96xf32>, vector<48x96xf32> -> vector<48x96xf32>
    %c0_3 = arith.constant 0 : index
    %c0_4 = arith.constant 0 : index
    %3 = vector.load %arg2[%c0_3, %c0_4] : memref<1x96xf32, #tpu.memory_space<vmem>>, vector<1x96xf32>
    %4 = vector.broadcast %3 : vector<1x96xf32> to vector<48x96xf32>
    %5 = arith.addf %2, %4 : vector<48x96xf32>
    %6 = vector.extract_strided_slice %5 {offsets = [0, 0], sizes = [16, 32], strides = [1, 1]} : vector<48x96xf32> to vector<16x32xf32>
    %cst_5 = arith.constant 0.176776692 : f32
    %7 = vector.broadcast %cst_5 : f32 to vector<16x32xf32>
    %8 = arith.mulf %6, %7 : vector<16x32xf32>
    %9 = vector.extract_strided_slice %5 {offsets = [16, 32], sizes = [16, 32], strides = [1, 1]} : vector<48x96xf32> to vector<16x32xf32>
    %10 = vector.extract_strided_slice %5 {offsets = [32, 64], sizes = [16, 32], strides = [1, 1]} : vector<48x96xf32> to vector<16x32xf32>
    %11 = vector.shape_cast %8 : vector<16x32xf32> to vector<2x8x32xf32>
    %12 = vector.shape_cast %9 : vector<16x32xf32> to vector<2x8x32xf32>
    %13 = vector.shape_cast %10 : vector<16x32xf32> to vector<2x8x32xf32>
    %14 = tpu.iota {dimensions = array<i32: 2>} : vector<1x1x8xi32>
    %c0_6 = arith.constant 0 : index
    %15 = memref.load %arg3[%c0_6] : memref<2xi32, #tpu.memory_space<smem>>
    %16 = vector.broadcast %15 : i32 to vector<1x1x8xi32>
    %17 = arith.cmpi slt, %14, %16 : vector<1x1x8xi32>
    %cst_7 = arith.constant 0.000000e+00 : f32
    %cst_8 = arith.constant -1.000000e+30 : f32
    %18 = vector.broadcast %cst_7 : f32 to vector<1x1x8xf32>
    %19 = vector.broadcast %cst_8 : f32 to vector<1x1x8xf32>
    %20 = arith.select %17, %18, %19 : vector<1x1x8xi1>, vector<1x1x8xf32>
    %c1 = arith.constant 1 : index
    %21 = memref.load %arg3[%c1] : memref<2xi32, #tpu.memory_space<smem>>
    %22 = vector.broadcast %21 : i32 to vector<1x1x8xi32>
    %23 = arith.cmpi slt, %14, %22 : vector<1x1x8xi32>
    %cst_9 = arith.constant 0.000000e+00 : f32
    %cst_10 = arith.constant -1.000000e+30 : f32
    %24 = vector.broadcast %cst_9 : f32 to vector<1x1x8xf32>
    %25 = vector.broadcast %cst_10 : f32 to vector<1x1x8xf32>
    %26 = arith.select %23, %24, %25 : vector<1x1x8xi1>, vector<1x1x8xf32>
    %27 = tpu.concatenate %20, %26 in 0 : vector<1x1x8xf32>, vector<1x1x8xf32> -> vector<2x1x8xf32>
    %cst_11 = arith.constant 0.000000e+00 : f32
    %28 = vector.broadcast %cst_11 : f32 to vector<2x8x8xf32>
    %29 = vector.extract_strided_slice %11 {offsets = [0, 0, 0], sizes = [2, 8, 4], strides = [1, 1, 1]} : vector<2x8x32xf32> to vector<2x8x4xf32>
    %30 = vector.extract_strided_slice %12 {offsets = [0, 0, 0], sizes = [2, 8, 4], strides = [1, 1, 1]} : vector<2x8x32xf32> to vector<2x8x4xf32>
    %31 = vector.extract_strided_slice %13 {offsets = [0, 0, 0], sizes = [2, 8, 4], strides = [1, 1, 1]} : vector<2x8x32xf32> to vector<2x8x4xf32>
    "tpu.trace_start"() <{level = 10 : i32, message = "bid,bjd->bij"}> : () -> ()
    %cst_12 = arith.constant dense<0.000000e+00> : vector<2x8x8xf32>
    %32 = tpu.matmul %29, %30, %cst_12 {dimension_numbers = #tpu.dot_dimension_numbers<[2], [2], [1], [1], [0, 0, 0, 1, 1, 1], [0], [0]>} : vector<2x8x4xf32>, vector<2x8x4xf32>, vector<2x8x8xf32> -> vector<2x8x8xf32>
    "tpu.trace_stop"() : () -> ()
    %33 = vector.broadcast %27 : vector<2x1x8xf32> to vector<2x8x8xf32>
    %34 = arith.addf %32, %33 : vector<2x8x8xf32>
    %cst_13 = arith.constant dense<0xFF800000> : vector<2x8xf32>
    %35 = vector.multi_reduction <maximumf>, %34, %cst_13 [2] : vector<2x8x8xf32> to vector<2x8xf32>
    %36 = vector.shape_cast %35 : vector<2x8xf32> to vector<2x8x1xf32>
    %37 = vector.broadcast %36 : vector<2x8x1xf32> to vector<2x8x8xf32>
    %38 = arith.subf %34, %37 : vector<2x8x8xf32>
    %39 = math.exp %38 : vector<2x8x8xf32>
    %cst_14 = arith.constant dense<0.000000e+00> : vector<2x8xf32>
    %40 = vector.multi_reduction <add>, %39, %cst_14 [2] : vector<2x8x8xf32> to vector<2x8xf32>
    %41 = vector.shape_cast %40 : vector<2x8xf32> to vector<2x8x1xf32>
    %42 = vector.broadcast %41 : vector<2x8x1xf32> to vector<2x8x8xf32>
    %43 = arith.divf %39, %42 : vector<2x8x8xf32>
    %44 = arith.addf %28, %43 : vector<2x8x8xf32>
    "tpu.trace_start"() <{level = 10 : i32, message = "bij,bjd->bid"}> : () -> ()
    %cst_15 = arith.constant dense<0.000000e+00> : vector<2x8x4xf32>
    %45 = tpu.matmul %43, %31, %cst_15 {dimension_numbers = #tpu.dot_dimension_numbers<[2], [1], [1], [2], [0, 0, 0, 1, 1, 2], [0], [0]>} : vector<2x8x8xf32>, vector<2x8x4xf32>, vector<2x8x4xf32> -> vector<2x8x4xf32>
    "tpu.trace_stop"() : () -> ()
    %46 = vector.extract_strided_slice %11 {offsets = [0, 0, 4], sizes = [2, 8, 4], strides = [1, 1, 1]} : vector<2x8x32xf32> to vector<2x8x4xf32>
    %47 = vector.extract_strided_slice %12 {offsets = [0, 0, 4], sizes = [2, 8, 4], strides = [1, 1, 1]} : vector<2x8x32xf32> to vector<2x8x4xf32>
    %48 = vector.extract_strided_slice %13 {offsets = [0, 0, 4], sizes = [2, 8, 4], strides = [1, 1, 1]} : vector<2x8x32xf32> to vector<2x8x4xf32>
    "tpu.trace_start"() <{level = 10 : i32, message = "bid,bjd->bij"}> : () -> ()
    %cst_16 = arith.constant dense<0.000000e+00> : vector<2x8x8xf32>
    %49 = tpu.matmul %46, %47, %cst_16 {dimension_numbers = #tpu.dot_dimension_numbers<[2], [2], [1], [1], [0, 0, 0, 1, 1, 1], [0], [0]>} : vector<2x8x4xf32>, vector<2x8x4xf32>, vector<2x8x8xf32> -> vector<2x8x8xf32>
    "tpu.trace_stop"() : () -> ()
    %50 = vector.broadcast %27 : vector<2x1x8xf32> to vector<2x8x8xf32>
    %51 = arith.addf %49, %50 : vector<2x8x8xf32>
    %cst_17 = arith.constant dense<0xFF800000> : vector<2x8xf32>
    %52 = vector.multi_reduction <maximumf>, %51, %cst_17 [2] : vector<2x8x8xf32> to vector<2x8xf32>
    %53 = vector.shape_cast %52 : vector<2x8xf32> to vector<2x8x1xf32>
    %54 = vector.broadcast %53 : vector<2x8x1xf32> to vector<2x8x8xf32>
    %55 = arith.subf %51, %54 : vector<2x8x8xf32>
    %56 = math.exp %55 : vector<2x8x8xf32>
    %cst_18 = arith.constant dense<0.000000e+00> : vector<2x8xf32>
    %57 = vector.multi_reduction <add>, %56, %cst_18 [2] : vector<2x8x8xf32> to vector<2x8xf32>
    %58 = vector.shape_cast %57 : vector<2x8xf32> to vector<2x8x1xf32>
    %59 = vector.broadcast %58 : vector<2x8x1xf32> to vector<2x8x8xf32>
    %60 = arith.divf %56, %59 : vector<2x8x8xf32>
    %61 = arith.addf %44, %60 : vector<2x8x8xf32>
    "tpu.trace_start"() <{level = 10 : i32, message = "bij,bjd->bid"}> : () -> ()
    %cst_19 = arith.constant dense<0.000000e+00> : vector<2x8x4xf32>
    %62 = tpu.matmul %60, %48, %cst_19 {dimension_numbers = #tpu.dot_dimension_numbers<[2], [1], [1], [2], [0, 0, 0, 1, 1, 2], [0], [0]>} : vector<2x8x8xf32>, vector<2x8x4xf32>, vector<2x8x4xf32> -> vector<2x8x4xf32>
    "tpu.trace_stop"() : () -> ()
    %63 = vector.extract_strided_slice %11 {offsets = [0, 0, 8], sizes = [2, 8, 4], strides = [1, 1, 1]} : vector<2x8x32xf32> to vector<2x8x4xf32>
    %64 = vector.extract_strided_slice %12 {offsets = [0, 0, 8], sizes = [2, 8, 4], strides = [1, 1, 1]} : vector<2x8x32xf32> to vector<2x8x4xf32>
    %65 = vector.extract_strided_slice %13 {offsets = [0, 0, 8], sizes = [2, 8, 4], strides = [1, 1, 1]} : vector<2x8x32xf32> to vector<2x8x4xf32>
    "tpu.trace_start"() <{level = 10 : i32, message = "bid,bjd->bij"}> : () -> ()
    %cst_20 = arith.constant dense<0.000000e+00> : vector<2x8x8xf32>
    %66 = tpu.matmul %63, %64, %cst_20 {dimension_numbers = #tpu.dot_dimension_numbers<[2], [2], [1], [1], [0, 0, 0, 1, 1, 1], [0], [0]>} : vector<2x8x4xf32>, vector<2x8x4xf32>, vector<2x8x8xf32> -> vector<2x8x8xf32>
    "tpu.trace_stop"() : () -> ()
    %67 = vector.broadcast %27 : vector<2x1x8xf32> to vector<2x8x8xf32>
    %68 = arith.addf %66, %67 : vector<2x8x8xf32>
    %cst_21 = arith.constant dense<0xFF800000> : vector<2x8xf32>
    %69 = vector.multi_reduction <maximumf>, %68, %cst_21 [2] : vector<2x8x8xf32> to vector<2x8xf32>
    %70 = vector.shape_cast %69 : vector<2x8xf32> to vector<2x8x1xf32>
    %71 = vector.broadcast %70 : vector<2x8x1xf32> to vector<2x8x8xf32>
    %72 = arith.subf %68, %71 : vector<2x8x8xf32>
    %73 = math.exp %72 : vector<2x8x8xf32>
    %cst_22 = arith.constant dense<0.000000e+00> : vector<2x8xf32>
    %74 = vector.multi_reduction <add>, %73, %cst_22 [2] : vector<2x8x8xf32> to vector<2x8xf32>
    %75 = vector.shape_cast %74 : vector<2x8xf32> to vector<2x8x1xf32>
    %76 = vector.broadcast %75 : vector<2x8x1xf32> to vector<2x8x8xf32>
    %77 = arith.divf %73, %76 : vector<2x8x8xf32>
    %78 = arith.addf %61, %77 : vector<2x8x8xf32>
    "tpu.trace_start"() <{level = 10 : i32, message = "bij,bjd->bid"}> : () -> ()
    %cst_23 = arith.constant dense<0.000000e+00> : vector<2x8x4xf32>
    %79 = tpu.matmul %77, %65, %cst_23 {dimension_numbers = #tpu.dot_dimension_numbers<[2], [1], [1], [2], [0, 0, 0, 1, 1, 2], [0], [0]>} : vector<2x8x8xf32>, vector<2x8x4xf32>, vector<2x8x4xf32> -> vector<2x8x4xf32>
    "tpu.trace_stop"() : () -> ()
    %80 = vector.extract_strided_slice %11 {offsets = [0, 0, 12], sizes = [2, 8, 4], strides = [1, 1, 1]} : vector<2x8x32xf32> to vector<2x8x4xf32>
    %81 = vector.extract_strided_slice %12 {offsets = [0, 0, 12], sizes = [2, 8, 4], strides = [1, 1, 1]} : vector<2x8x32xf32> to vector<2x8x4xf32>
    %82 = vector.extract_strided_slice %13 {offsets = [0, 0, 12], sizes = [2, 8, 4], strides = [1, 1, 1]} : vector<2x8x32xf32> to vector<2x8x4xf32>
    "tpu.trace_start"() <{level = 10 : i32, message = "bid,bjd->bij"}> : () -> ()
    %cst_24 = arith.constant dense<0.000000e+00> : vector<2x8x8xf32>
    %83 = tpu.matmul %80, %81, %cst_24 {dimension_numbers = #tpu.dot_dimension_numbers<[2], [2], [1], [1], [0, 0, 0, 1, 1, 1], [0], [0]>} : vector<2x8x4xf32>, vector<2x8x4xf32>, vector<2x8x8xf32> -> vector<2x8x8xf32>
    "tpu.trace_stop"() : () -> ()
    %84 = vector.broadcast %27 : vector<2x1x8xf32> to vector<2x8x8xf32>
    %85 = arith.addf %83, %84 : vector<2x8x8xf32>
    %cst_25 = arith.constant dense<0xFF800000> : vector<2x8xf32>
    %86 = vector.multi_reduction <maximumf>, %85, %cst_25 [2] : vector<2x8x8xf32> to vector<2x8xf32>
    %87 = vector.shape_cast %86 : vector<2x8xf32> to vector<2x8x1xf32>
    %88 = vector.broadcast %87 : vector<2x8x1xf32> to vector<2x8x8xf32>
    %89 = arith.subf %85, %88 : vector<2x8x8xf32>
    %90 = math.exp %89 : vector<2x8x8xf32>
    %cst_26 = arith.constant dense<0.000000e+00> : vector<2x8xf32>
    %91 = vector.multi_reduction <add>, %90, %cst_26 [2] : vector<2x8x8xf32> to vector<2x8xf32>
    %92 = vector.shape_cast %91 : vector<2x8xf32> to vector<2x8x1xf32>
    %93 = vector.broadcast %92 : vector<2x8x1xf32> to vector<2x8x8xf32>
    %94 = arith.divf %90, %93 : vector<2x8x8xf32>
    %95 = arith.addf %78, %94 : vector<2x8x8xf32>
    "tpu.trace_start"() <{level = 10 : i32, message = "bij,bjd->bid"}> : () -> ()
    %cst_27 = arith.constant dense<0.000000e+00> : vector<2x8x4xf32>
    %96 = tpu.matmul %94, %82, %cst_27 {dimension_numbers = #tpu.dot_dimension_numbers<[2], [1], [1], [2], [0, 0, 0, 1, 1, 2], [0], [0]>} : vector<2x8x8xf32>, vector<2x8x4xf32>, vector<2x8x4xf32> -> vector<2x8x4xf32>
    "tpu.trace_stop"() : () -> ()
    %97 = vector.extract_strided_slice %11 {offsets = [0, 0, 16], sizes = [2, 8, 4], strides = [1, 1, 1]} : vector<2x8x32xf32> to vector<2x8x4xf32>
    %98 = vector.extract_strided_slice %12 {offsets = [0, 0, 16], sizes = [2, 8, 4], strides = [1, 1, 1]} : vector<2x8x32xf32> to vector<2x8x4xf32>
    %99 = vector.extract_strided_slice %13 {offsets = [0, 0, 16], sizes = [2, 8, 4], strides = [1, 1, 1]} : vector<2x8x32xf32> to vector<2x8x4xf32>
    "tpu.trace_start"() <{level = 10 : i32, message = "bid,bjd->bij"}> : () -> ()
    %cst_28 = arith.constant dense<0.000000e+00> : vector<2x8x8xf32>
    %100 = tpu.matmul %97, %98, %cst_28 {dimension_numbers = #tpu.dot_dimension_numbers<[2], [2], [1], [1], [0, 0, 0, 1, 1, 1], [0], [0]>} : vector<2x8x4xf32>, vector<2x8x4xf32>, vector<2x8x8xf32> -> vector<2x8x8xf32>
    "tpu.trace_stop"() : () -> ()
    %101 = vector.broadcast %27 : vector<2x1x8xf32> to vector<2x8x8xf32>
    %102 = arith.addf %100, %101 : vector<2x8x8xf32>
    %cst_29 = arith.constant dense<0xFF800000> : vector<2x8xf32>
    %103 = vector.multi_reduction <maximumf>, %102, %cst_29 [2] : vector<2x8x8xf32> to vector<2x8xf32>
    %104 = vector.shape_cast %103 : vector<2x8xf32> to vector<2x8x1xf32>
    %105 = vector.broadcast %104 : vector<2x8x1xf32> to vector<2x8x8xf32>
    %106 = arith.subf %102, %105 : vector<2x8x8xf32>
    %107 = math.exp %106 : vector<2x8x8xf32>
    %cst_30 = arith.constant dense<0.000000e+00> : vector<2x8xf32>
    %108 = vector.multi_reduction <add>, %107, %cst_30 [2] : vector<2x8x8xf32> to vector<2x8xf32>
    %109 = vector.shape_cast %108 : vector<2x8xf32> to vector<2x8x1xf32>
    %110 = vector.broadcast %109 : vector<2x8x1xf32> to vector<2x8x8xf32>
    %111 = arith.divf %107, %110 : vector<2x8x8xf32>
    %112 = arith.addf %95, %111 : vector<2x8x8xf32>
    "tpu.trace_start"() <{level = 10 : i32, message = "bij,bjd->bid"}> : () -> ()
    %cst_31 = arith.constant dense<0.000000e+00> : vector<2x8x4xf32>
    %113 = tpu.matmul %111, %99, %cst_31 {dimension_numbers = #tpu.dot_dimension_numbers<[2], [1], [1], [2], [0, 0, 0, 1, 1, 2], [0], [0]>} : vector<2x8x8xf32>, vector<2x8x4xf32>, vector<2x8x4xf32> -> vector<2x8x4xf32>
    "tpu.trace_stop"() : () -> ()
    %114 = vector.extract_strided_slice %11 {offsets = [0, 0, 20], sizes = [2, 8, 4], strides = [1, 1, 1]} : vector<2x8x32xf32> to vector<2x8x4xf32>
    %115 = vector.extract_strided_slice %12 {offsets = [0, 0, 20], sizes = [2, 8, 4], strides = [1, 1, 1]} : vector<2x8x32xf32> to vector<2x8x4xf32>
    %116 = vector.extract_strided_slice %13 {offsets = [0, 0, 20], sizes = [2, 8, 4], strides = [1, 1, 1]} : vector<2x8x32xf32> to vector<2x8x4xf32>
    "tpu.trace_start"() <{level = 10 : i32, message = "bid,bjd->bij"}> : () -> ()
    %cst_32 = arith.constant dense<0.000000e+00> : vector<2x8x8xf32>
    %117 = tpu.matmul %114, %115, %cst_32 {dimension_numbers = #tpu.dot_dimension_numbers<[2], [2], [1], [1], [0, 0, 0, 1, 1, 1], [0], [0]>} : vector<2x8x4xf32>, vector<2x8x4xf32>, vector<2x8x8xf32> -> vector<2x8x8xf32>
    "tpu.trace_stop"() : () -> ()
    %118 = vector.broadcast %27 : vector<2x1x8xf32> to vector<2x8x8xf32>
    %119 = arith.addf %117, %118 : vector<2x8x8xf32>
    %cst_33 = arith.constant dense<0xFF800000> : vector<2x8xf32>
    %120 = vector.multi_reduction <maximumf>, %119, %cst_33 [2] : vector<2x8x8xf32> to vector<2x8xf32>
    %121 = vector.shape_cast %120 : vector<2x8xf32> to vector<2x8x1xf32>
    %122 = vector.broadcast %121 : vector<2x8x1xf32> to vector<2x8x8xf32>
    %123 = arith.subf %119, %122 : vector<2x8x8xf32>
    %124 = math.exp %123 : vector<2x8x8xf32>
    %cst_34 = arith.constant dense<0.000000e+00> : vector<2x8xf32>
    %125 = vector.multi_reduction <add>, %124, %cst_34 [2] : vector<2x8x8xf32> to vector<2x8xf32>
    %126 = vector.shape_cast %125 : vector<2x8xf32> to vector<2x8x1xf32>
    %127 = vector.broadcast %126 : vector<2x8x1xf32> to vector<2x8x8xf32>
    %128 = arith.divf %124, %127 : vector<2x8x8xf32>
    %129 = arith.addf %112, %128 : vector<2x8x8xf32>
    "tpu.trace_start"() <{level = 10 : i32, message = "bij,bjd->bid"}> : () -> ()
    %cst_35 = arith.constant dense<0.000000e+00> : vector<2x8x4xf32>
    %130 = tpu.matmul %128, %116, %cst_35 {dimension_numbers = #tpu.dot_dimension_numbers<[2], [1], [1], [2], [0, 0, 0, 1, 1, 2], [0], [0]>} : vector<2x8x8xf32>, vector<2x8x4xf32>, vector<2x8x4xf32> -> vector<2x8x4xf32>
    "tpu.trace_stop"() : () -> ()
    %131 = vector.extract_strided_slice %11 {offsets = [0, 0, 24], sizes = [2, 8, 4], strides = [1, 1, 1]} : vector<2x8x32xf32> to vector<2x8x4xf32>
    %132 = vector.extract_strided_slice %12 {offsets = [0, 0, 24], sizes = [2, 8, 4], strides = [1, 1, 1]} : vector<2x8x32xf32> to vector<2x8x4xf32>
    %133 = vector.extract_strided_slice %13 {offsets = [0, 0, 24], sizes = [2, 8, 4], strides = [1, 1, 1]} : vector<2x8x32xf32> to vector<2x8x4xf32>
    "tpu.trace_start"() <{level = 10 : i32, message = "bid,bjd->bij"}> : () -> ()
    %cst_36 = arith.constant dense<0.000000e+00> : vector<2x8x8xf32>
    %134 = tpu.matmul %131, %132, %cst_36 {dimension_numbers = #tpu.dot_dimension_numbers<[2], [2], [1], [1], [0, 0, 0, 1, 1, 1], [0], [0]>} : vector<2x8x4xf32>, vector<2x8x4xf32>, vector<2x8x8xf32> -> vector<2x8x8xf32>
    "tpu.trace_stop"() : () -> ()
    %135 = vector.broadcast %27 : vector<2x1x8xf32> to vector<2x8x8xf32>
    %136 = arith.addf %134, %135 : vector<2x8x8xf32>
    %cst_37 = arith.constant dense<0xFF800000> : vector<2x8xf32>
    %137 = vector.multi_reduction <maximumf>, %136, %cst_37 [2] : vector<2x8x8xf32> to vector<2x8xf32>
    %138 = vector.shape_cast %137 : vector<2x8xf32> to vector<2x8x1xf32>
    %139 = vector.broadcast %138 : vector<2x8x1xf32> to vector<2x8x8xf32>
    %140 = arith.subf %136, %139 : vector<2x8x8xf32>
    %141 = math.exp %140 : vector<2x8x8xf32>
    %cst_38 = arith.constant dense<0.000000e+00> : vector<2x8xf32>
    %142 = vector.multi_reduction <add>, %141, %cst_38 [2] : vector<2x8x8xf32> to vector<2x8xf32>
    %143 = vector.shape_cast %142 : vector<2x8xf32> to vector<2x8x1xf32>
    %144 = vector.broadcast %143 : vector<2x8x1xf32> to vector<2x8x8xf32>
    %145 = arith.divf %141, %144 : vector<2x8x8xf32>
    %146 = arith.addf %129, %145 : vector<2x8x8xf32>
    "tpu.trace_start"() <{level = 10 : i32, message = "bij,bjd->bid"}> : () -> ()
    %cst_39 = arith.constant dense<0.000000e+00> : vector<2x8x4xf32>
    %147 = tpu.matmul %145, %133, %cst_39 {dimension_numbers = #tpu.dot_dimension_numbers<[2], [1], [1], [2], [0, 0, 0, 1, 1, 2], [0], [0]>} : vector<2x8x8xf32>, vector<2x8x4xf32>, vector<2x8x4xf32> -> vector<2x8x4xf32>
    "tpu.trace_stop"() : () -> ()
    %148 = vector.extract_strided_slice %11 {offsets = [0, 0, 28], sizes = [2, 8, 4], strides = [1, 1, 1]} : vector<2x8x32xf32> to vector<2x8x4xf32>
    %149 = vector.extract_strided_slice %12 {offsets = [0, 0, 28], sizes = [2, 8, 4], strides = [1, 1, 1]} : vector<2x8x32xf32> to vector<2x8x4xf32>
    %150 = vector.extract_strided_slice %13 {offsets = [0, 0, 28], sizes = [2, 8, 4], strides = [1, 1, 1]} : vector<2x8x32xf32> to vector<2x8x4xf32>
    "tpu.trace_start"() <{level = 10 : i32, message = "bid,bjd->bij"}> : () -> ()
    %cst_40 = arith.constant dense<0.000000e+00> : vector<2x8x8xf32>
    %151 = tpu.matmul %148, %149, %cst_40 {dimension_numbers = #tpu.dot_dimension_numbers<[2], [2], [1], [1], [0, 0, 0, 1, 1, 1], [0], [0]>} : vector<2x8x4xf32>, vector<2x8x4xf32>, vector<2x8x8xf32> -> vector<2x8x8xf32>
    "tpu.trace_stop"() : () -> ()
    %152 = vector.broadcast %27 : vector<2x1x8xf32> to vector<2x8x8xf32>
    %153 = arith.addf %151, %152 : vector<2x8x8xf32>
    %cst_41 = arith.constant dense<0xFF800000> : vector<2x8xf32>
    %154 = vector.multi_reduction <maximumf>, %153, %cst_41 [2] : vector<2x8x8xf32> to vector<2x8xf32>
    %155 = vector.shape_cast %154 : vector<2x8xf32> to vector<2x8x1xf32>
    %156 = vector.broadcast %155 : vector<2x8x1xf32> to vector<2x8x8xf32>
    %157 = arith.subf %153, %156 : vector<2x8x8xf32>
    %158 = math.exp %157 : vector<2x8x8xf32>
    %cst_42 = arith.constant dense<0.000000e+00> : vector<2x8xf32>
    %159 = vector.multi_reduction <add>, %158, %cst_42 [2] : vector<2x8x8xf32> to vector<2x8xf32>
    %160 = vector.shape_cast %159 : vector<2x8xf32> to vector<2x8x1xf32>
    %161 = vector.broadcast %160 : vector<2x8x1xf32> to vector<2x8x8xf32>
    %162 = arith.divf %158, %161 : vector<2x8x8xf32>
    %163 = arith.addf %146, %162 : vector<2x8x8xf32>
    "tpu.trace_start"() <{level = 10 : i32, message = "bij,bjd->bid"}> : () -> ()
    %cst_43 = arith.constant dense<0.000000e+00> : vector<2x8x4xf32>
    %164 = tpu.matmul %162, %150, %cst_43 {dimension_numbers = #tpu.dot_dimension_numbers<[2], [1], [1], [2], [0, 0, 0, 1, 1, 2], [0], [0]>} : vector<2x8x8xf32>, vector<2x8x4xf32>, vector<2x8x4xf32> -> vector<2x8x4xf32>
    "tpu.trace_stop"() : () -> ()
    %165 = tpu.concatenate %45, %62, %79, %96, %113, %130, %147, %164 in 2 : vector<2x8x4xf32>, vector<2x8x4xf32>, vector<2x8x4xf32>, vector<2x8x4xf32>, vector<2x8x4xf32>, vector<2x8x4xf32>, vector<2x8x4xf32>, vector<2x8x4xf32> -> vector<2x8x32xf32>
    %c0_44 = arith.constant 0 : index
    %c0_45 = arith.constant 0 : index
    %c0_46 = arith.constant 0 : index
    %166 = vector.load %arg4[%c0_44, %c0_45, %c0_46] : memref<2x8x32xf32, #tpu.memory_space<vmem>>, vector<2x8x32xf32>
    tpu.vector_store %arg4[%c0_44, %c0_45, %c0_46], %165 {strides = array<i32>} : memref<2x8x32xf32, #tpu.memory_space<vmem>>, vector<2x8x32xf32>,
    %cst_47 = arith.constant 1.250000e-01 : f32
    %167 = vector.broadcast %cst_47 : f32 to vector<2x8x8xf32>
    %168 = arith.mulf %163, %167 : vector<2x8x8xf32>
    %c0_48 = arith.constant 0 : index
    %c0_49 = arith.constant 0 : index
    %c0_50 = arith.constant 0 : index
    %169 = vector.load %arg5[%c0_48, %c0_49, %c0_50] : memref<2x8x8xf32, #tpu.memory_space<vmem>>, vector<2x8x8xf32>
    tpu.vector_store %arg5[%c0_48, %c0_49, %c0_50], %168 {strides = array<i32>} : memref<2x8x8xf32, #tpu.memory_space<vmem>>, vector<2x8x8xf32>,
    return
  }
}

</mosaic_0001>

<bundles_post_ra>
// kernel: tpu_custom_call.1
= control target key start
LH: loop header
LB: loop body
LE: loop exit
PB: predicated region body
PF: predicated region fallthrough
CT: control target
= control target key end

     0   :  { %11 = vsyncpa [#allocation4], 0  ;;  %s3934_s0 = inlined_call_operand.vmem [shape: f32[48,32], index: 0, kind: input, shape index: {}]   ;;  %s3935_s1 = inlined_call_operand.vmem [shape: f32[32,96], index: 1, kind: input, shape index: {}]   ;;  %s3936_s2 = inlined_call_operand.vmem [shape: f32[1,96], index: 2, kind: input, shape index: {}]   ;;  %s3937_s3 = inlined_call_operand.vmem [shape: s32[2], index: 3, kind: input, shape index: {}]   ;;  %s3938_s4 = inlined_call_operand.hbm [shape: f32[2,8,32], index: 4, kind: output, shape index: {0}]   ;;  %s3939_s5 = inlined_call_operand.hbm [shape: f32[2,8,8], index: 5, kind: output, shape index: {1}]  }
   0x1   :  { %12 = vsyncpa [#allocation3], 0 }
   0x2   :  { %13 = vsyncpa [#allocation7], 0  ;;  %s26_s20 = sshll.u32 %s3937_s3, 4  ;;  %s27_s20 = int_to_ptr.vmem [resolvable:$true] %s26_s20 }
   0x3   :  { %s3375_s21 = scalar_lea.vmem %s27_s20, 16  ;;  %p3380_p1 = scmp.lt.s32.totalorder %s27_s20, %s27_s20 }
   0x4   :  { %p3376_p0 = scmp.ne.s32.totalorder %s27_s20, %s3375_s21  ;;  %p3381_p2 = scmp.lt.s32.totalorder %s3375_s21, %s3375_s21 }
   0x6   :  { %p3382_p3 = por %p3381_p2, %p3380_p1 }
   0x8   :  { %p3383_p4 = pnand %p3382_p3, %p3376_p0 }
   0xa   :  { %3386 = shalt.err (!%p3383_p4)
}
   0xb   :  { %s3437_s22 = smov [#allocation2]  }
   0xc   :  { %29 = dma.vmem_to_smem %s27_s20, 16, %s3437_s22, [#allocation4]  }
   0xd   :  { %3431 = dma.done.wait [#allocation4], 16  }
   0xe   :  { %3432 = vsyncadd [#allocation4], 4294967280 }
   0xf   :  { %33 = sfence }
  0x10   :  { %v40_v0 = vld [vmem:[%s3935_s1] sm:$0xff]  ;;  %v41_v1 = vld [vmem:[%s3935_s1 + $0x8] sm:$0xff]  ;;  %v42_v2 = vld [vmem:[%s3935_s1 + $0x10] sm:$0xff]  ;;  %vm51_vm0 = vcmask 261120   ;;  %v3438_v10 = vmov 0.0   ;;  %vm3439_vm1 = vmmov 0   ;;  %v167_v28 = vlaneseq }
  0x11   :  { %v3266_v3 = vpack.c.bf16 %v41_v1, %v40_v0  ;;  %v43_v4 = vld [vmem:[%s3935_s1 + $0x18] sm:$0xff]  ;;  %v34_v5 = vld [vmem:[%s3934_s0] sm:$0xff]  ;;  %v35_v7 = vld [vmem:[%s3934_s0 + $0x8] sm:$0xff]  ;;  %3106 = vmatprep.subr.mxu1 %v3438_v10  ;;  %3108 = vmatprep.mubr.msk.f32.mxu1 %vm3439_vm1, %v3438_v10  ;;  %s3440_s18 = smov 96   ;;  %vm188_vm2 = vcmask 31744   ;;  %vm342_vm5 = vcmask 64512  }
  0x12   :  { %v3270_v6 = vpack.c.bf16 %v43_v4, %v42_v2  ;;  %3097 = vmatprep.mubr.msk.f32.mxu0 %vm51_vm0, %v34_v5  ;;  %v36_v8 = vld [vmem:[%s3934_s0 + $0x10] sm:$0xff]  ;;  %v37_v9 = vld [vmem:[%s3934_s0 + $0x18] sm:$0xff]  ;;  %v38_v13 = vld [vmem:[%s3934_s0 + $0x20] sm:$0xff]  ;;  %v168_v29 = vand.u32 127, %v167_v28  ;;  %v178_v31 = vshrl.u32 %v167_v28, 7  ;;  %s3442_s19 = smov 64  }
  0x13   :  { %3267 = vmatprep.subr.bf16.mxu0 %v3266_v3  ;;  %v39_v14 = vld [vmem:[%s3934_s0 + $0x28] sm:$0xff]  ;;  %v2959_v16 = vld [vmem:[%s3936_s2] ss:$0 sm:$0xff]  ;;  %s169_s0 = sld [smem:[#allocation2]]  ;;  %s2966_s2 = sld [smem:[#allocation2 + $0x1]] }
  0x14   :  { %3269 = vmatpush3.bf16.msra.mxu0 %v3266_v3  ;;  %v179_v33 = vsub.s32 0, %v178_v31  ;;  %v3441_v34 = vmov -1e+30   ;;  %s3443_s20 = smov 92   ;;  %s3444_s21 = smov 124  }
  0x15   :  { %3271 = vmatprep.subr.bf16.mxu0 %v3270_v6  ;;  %s3445_s22 = smov 60   ;;  %s3446_s23 = smov 120  }
  0x16   :  { %s3447_s24 = smov 88   ;;  %s3448_s25 = smov 56  }
  0x17   :  { %s3449_s26 = smov 84   ;;  %s3450_s3 = smov 116  }
  0x18   :  { %3273 = vmatpush3.bf16.msra.mxu0 %v3270_v6  ;;  %s3451_s27 = smov 52   ;;  %s3452_s28 = smov 80  }
  0x19   :  { %3126 = vmatprep.subr.mxu0 %v3438_v10  ;;  %v170_v30 = vstv %s169_s0  ;;  %v174_v32 = vstv %s2966_s2  ;;  %s3453_s29 = smov 112   ;;  %s3454_s30 = smov 48  }
  0x1a   :  { %vm171_vm3 = vcmp.lt.s32.totalorder %v168_v29, %v170_v30  ;;  %vm175_vm4 = vcmp.lt.s32.totalorder %v168_v29, %v174_v32  ;;  %s3455_s6 = smov 76   ;;  %s3456_s7 = smov 108  }
  0x1b   :  { %3098 = vmatmul.mubr.msk.f32.vlgmr.msra.gmra.mrb[0].mxu0 %vm51_vm0, %v35_v7  ;;  %v172_v35 = vsel %vm171_vm3, 0.0, %v3441_v34  ;;  %v176_v37 = vsel %vm175_vm4, 0.0, %v3441_v34  ;;  %s3457_s8 = smov 44   ;;  %s3458_s9 = smov 72  }
  0x1c   :  { %3100 = vmatprep.mubr.msk.f32.mxu0 %vm51_vm0, %v36_v8  ;;  %v3574_v36 = vrot.slane %v172_v35, %v179_v33  ;;  %v3577_v41 = vrot.slane %v176_v37, %v179_v33  ;;  %s3459_s10 = smov 104   ;;  %s3460_s1 = smov 40  }
  0x1d   :  { %s3461_s11 = smov 68   ;;  %s3462_s12 = smov 100  }
  0x1e   :  { %s3463_s13 = smov 36   ;;  %s3464_s14 = smov 4  }
  0x1f   :  { %3101 = vmatmul.mubr.msk.f32.gmra.mrb[2].mxu0 %vm51_vm0, %v37_v9  ;;  %s3465_s15 = smov 8   ;;  %s3466_s16 = smov 12  }
  0x20   :  { %3103 = vmatprep.mubr.msk.f32.mxu0 %vm51_vm0, %v38_v13  ;;  %s3467_s17 = smov 16   ;;  %s3469_s0 = smov 24  }
  0x21   :  { %s3470_s2 = smov 28  }
  0x23   :  { %3104 = vmatmul.mubr.msk.f32.gmra.mrb[4].mxu0 %vm51_vm0, %v39_v14 }
  0x24   :  { %3128 = vmatprep.mubr.msk.f32.mxu0 %vm3439_vm1, %v3438_v10 }
  0xee   :  { %v3099_v11 = vpop.f32.mrb[0].mxu0 }
  0xef   :  { %v136_v12 = vpop.f32.mrb[1].mxu0  ;;  %v142_v22 = vadd.f32 %v3099_v11, %v2959_v16 }
  0xf0   :  { %v137_v20 = vadd.f32 %v2959_v16, %v136_v12 }
  0xf1   :  { %v3567_v25 = vmul.f32 0.17677669, %v142_v22 }
  0xf2   :  { %v3102_v15 = vpop.f32.mrb[2].mxu0  ;;  %v3559_v23 = vmul.f32 0.17677669, %v137_v20 }
  0xf3   :  { %v146_v17 = vpop.f32.mrb[3].mxu0  ;;  %v3555_v19 = vadd.f32 %v3102_v15, %v2959_v16 }
  0xf4   :  { %v3552_v18 = vadd.f32 %v2959_v16, %v146_v17 }
  0xf6   :  { %186 = vrot.lane.b32.xlu0 %v3552_v18, %s3440_s18  ;;  %v3105_v26 = vpop.f32.mrb[4].mxu0 }
  0xf7   :  { %v156_v27 = vpop.f32.mrb[5].mxu0  ;;  %v3584_v48 = vadd.f32 %v3105_v26, %v2959_v16 }
  0xf8   :  { %v3582_v47 = vadd.f32 %v2959_v16, %v156_v27 }
  0xfa   :  { %265 = vrot.lane.b32.xlu0 %v3555_v19, %s3440_s18  ;;  %s3468_s18 = smov 20  }
 0x168   :  { %v187_v21 = vpop.permute.xlu0 %186 }
 0x169   :  { %3107 = vmatpush3.xpose.msk.msra.mxu1 %vm188_vm2, %v187_v21 }
 0x16a   :  { %3111 = vmatprep.subr.mxu1 %v3438_v10 }
 0x16c   :  { %v266_v24 = vpop.permute.xlu0 %265  ;;  %3109 = vmatmul.mubr.msk.f32.vlgmr.msra.gmra.mrb[0].mxu1 %vm188_vm2, %v3559_v23 }
 0x16d   :  { %3112 = vmatpush3.xpose.msk.msra.mxu1 %vm188_vm2, %v266_v24  ;;  %3113 = vmatprep.mubr.msk.f32.mxu1 %vm3439_vm1, %v3438_v10 }
 0x16e   :  { %3116 = vmatprep.subr.mxu1 %v3438_v10 }
 0x170   :  { %3114 = vmatmul.mubr.msk.f32.vlgmr.msra.gmra.mrb[2].mxu1 %vm188_vm2, %v3567_v25 }
 0x171   :  { %3118 = vmatprep.mubr.msk.f32.mxu1 %vm3439_vm1, %v3438_v10 }
 0x23f   :  { %v260_v38 = vpop.f32.mrb[0].mxu1 }
 0x240   :  { %v261_v39 = vadd.f32 %v260_v38, %v3574_v36  ;;  %v3110_v40 = vpop.f32.mrb[1].mxu1 }
 0x242   :  { %v343_v42 = vsel %vm342_vm5, %v261_v39, -inf }
 0x243   :  { %344 = vmax.xlane.f32.xlu1 %v343_v42  ;;  %v338_v43 = vpop.f32.mrb[2].mxu1 }
 0x244   :  { %v339_v44 = vadd.f32 %v338_v43, %v3577_v41  ;;  %v3115_v45 = vpop.f32.mrb[3].mxu1 }
 0x246   :  { %v346_v46 = vsel %vm342_vm5, %v339_v44, -inf }
 0x247   :  { %347 = vmax.xlane.f32.xlu1 %v346_v46 }
 0x258   :  { %368 = vrot.lane.b32.xlu1 %v3582_v47, %s3442_s19 }
 0x25c   :  { %445 = vrot.lane.b32.xlu1 %v3584_v48, %s3442_s19  ;;  %s3471_s19 = smov [#allocation6]  }
 0x260   :  { %523 = vrot.lane.b32.xlu1 %v3552_v18, %s3443_s20 }
 0x264   :  { %601 = vrot.lane.b32.xlu1 %v3555_v19, %s3443_s20  ;;  %s2943_s20 = sshll.u32 %s3471_s19, 4  ;;  %s2944_s20 = int_to_ptr.vmem [resolvable:$true] %s2943_s20 }
 0x265   :  { %p3392_p6 = scmp.lt.s32.totalorder %s2944_s20, %s2944_s20 }
 0x2d0   :  { %v345_v49 = vpop.xlane.xlu1 %344 }
 0x2d1   :  { %v349_v50 = vsub.f32 %v261_v39, %v345_v49 }
 0x2d3   :  { %v351_v51 = vmul.f32 1.442695, %v349_v50 }
 0x2d4   :  { %v348_v52 = vpop.xlane.xlu1 %347 }
 0x2d5   :  { %3311 = vpow2.f32 %v351_v51  ;;  %v350_v53 = vsub.f32 %v339_v44, %v348_v52 }
 0x2d7   :  { %v353_v54 = vmul.f32 1.442695, %v350_v53 }
 0x2d8   :  { %v369_v55 = vpop.permute.xlu1 %368 }
 0x2d9   :  { %3313 = vpow2.f32 %v353_v54  ;;  %3117 = vmatpush3.msra.mxu1 %v369_v55 }
 0x2da   :  { %3121 = vmatprep.subr.mxu1 %v3438_v10 }
 0x2dc   :  { %v446_v56 = vpop.permute.xlu1 %445 }
 0x2df   :  { %v3312_v57 = vpop.eup %3311 }
 0x2e0   :  { %v524_v58 = vpop.permute.xlu1 %523  ;;  %v355_v59 = vsel %vm342_vm5, %v3312_v57, 0.0 }
 0x2e1   :  { %356 = vadd.xlane.f32.xlu0 %v355_v59  ;;  %3127 = vmatpush3.xpose.msk.msra.mxu0 %vm188_vm2, %v524_v58 }
 0x2e2   :  { %3136 = vmatprep.subr.mxu0 %v3438_v10 }
 0x2e3   :  { %v3314_v60 = vpop.eup %3313 }
 0x2e4   :  { %v358_v61 = vsel %vm342_vm5, %v3314_v60, 0.0  ;;  %v602_v62 = vpop.permute.xlu1 %601 }
 0x2e5   :  { %359 = vadd.xlane.f32.xlu1 %v358_v61 }
 0x2f6   :  { %599 = vrot.lane.b32.xlu1 %v3567_v25, %s3444_s21 }
 0x2f7   :  { %521 = vrot.lane.b32.xlu0 %v3559_v23, %s3444_s21  ;;  %s3387_s21 = scalar_lea.vmem %s2944_s20, 256 }
 0x2f8   :  { %p3388_p5 = scmp.ne.s32.totalorder %s2944_s20, %s3387_s21  ;;  %p3393_p7 = scmp.lt.s32.totalorder %s3387_s21, %s3387_s21 }
 0x2fa   :  { %p3394_p8 = por %p3393_p7, %p3392_p6 }
 0x2fc   :  { %p3395_p9 = pnand %p3394_p8, %p3388_p5 }
 0x36e   :  { %v357_v63 = vpop.xlane.xlu0 %356 }
 0x36f   :  { %3315 = vrcp.f32 %v357_v63 }
 0x372   :  { %v522_v0 = vpop.permute.xlu0 %521  ;;  %v360_v1 = vpop.xlane.xlu1 %359 }
 0x373   :  { %3317 = vrcp.f32 %v360_v1  ;;  %3129 = vmatmul.mubr.msk.f32.vlgmr.msra.gmra.mrb[6].mxu0 %vm188_vm2, %v522_v0 }
 0x374   :  { %3138 = vmatprep.mubr.msk.f32.mxu0 %vm3439_vm1, %v3438_v10 }
 0x376   :  { %v600_v6 = vpop.permute.xlu1 %599 }
 0x379   :  { %v3316_v2 = vpop.eup %3315 }
 0x37a   :  { %v3600_v3 = vmul.f32 %v3316_v2, %v3312_v57 }
 0x37c   :  { %3119 = vmatmul.mubr.msk.f32.vlgmr.msra.gmra.mrb[4].mxu1 %vm342_vm5, %v3600_v3 }
 0x37d   :  { %v3318_v4 = vpop.eup %3317  ;;  %3122 = vmatpush3.msra.mxu1 %v446_v56  ;;  %3123 = vmatprep.mubr.msk.f32.mxu1 %vm3439_vm1, %v3438_v10 }
 0x37e   :  { %v3606_v5 = vmul.f32 %v3318_v4, %v3314_v60  ;;  %3131 = vmatprep.subr.mxu1 %v3438_v10 }
 0x380   :  { %3124 = vmatmul.mubr.msk.f32.vlgmr.msra.gmra.mrb[6].mxu1 %vm342_vm5, %v3606_v5 }
 0x381   :  { %3133 = vmatprep.mubr.msk.f32.mxu1 %vm3439_vm1, %v3438_v10 }
 0x384   :  { %3132 = vmatpush3.xpose.msk.msra.mxu1 %vm188_vm2, %v602_v62 }
 0x385   :  { %3141 = vmatprep.subr.mxu1 %v3438_v10 }
 0x387   :  { %3134 = vmatmul.mubr.msk.f32.vlgmr.msra.gmra.mrb[8].mxu1 %vm188_vm2, %v600_v6 }
 0x388   :  { %3143 = vmatprep.mubr.msk.f32.mxu1 %vm3439_vm1, %v3438_v10 }
 0x446   :  { %v595_v7 = vpop.f32.mrb[6].mxu0 }
 0x447   :  { %v596_v8 = vadd.f32 %v595_v7, %v3574_v36  ;;  %v3130_v9 = vpop.f32.mrb[7].mxu0 }
 0x449   :  { %v677_v11 = vsel %vm342_vm5, %v596_v8, -inf }
 0x44a   :  { %678 = vmax.xlane.f32.xlu1 %v677_v11 }
 0x44f   :  { %v3620_v12 = vpop.f32.mrb[4].mxu1 }
 0x450   :  { %v3120_v13 = vpop.f32.mrb[5].mxu1 }
 0x453   :  { %v3622_v14 = vpop.f32.mrb[6].mxu1 }
 0x454   :  { %v3125_v15 = vpop.f32.mrb[7].mxu1 }
 0x45a   :  { %v673_v16 = vpop.f32.mrb[8].mxu1 }
 0x45b   :  { %v674_v17 = vadd.f32 %v673_v16, %v3577_v41  ;;  %v3135_v20 = vpop.f32.mrb[9].mxu1 }
 0x45d   :  { %v680_v21 = vsel %vm342_vm5, %v674_v17, -inf }
 0x45e   :  { %681 = vmax.xlane.f32.xlu0 %v680_v21 }
 0x474   :  { %777 = vrot.lane.b32.xlu0 %v3584_v48, %s3445_s22 }
 0x478   :  { %853 = vrot.lane.b32.xlu0 %v3559_v23, %s3446_s23 }
 0x4d7   :  { %v679_v22 = vpop.xlane.xlu1 %678 }
 0x4d8   :  { %v683_v24 = vsub.f32 %v596_v8, %v679_v22 }
 0x4da   :  { %v685_v26 = vmul.f32 1.442695, %v683_v24 }
 0x4dc   :  { %3319 = vpow2.f32 %v685_v26 }
 0x4e6   :  { %v3320_v27 = vpop.eup %3319 }
 0x4e7   :  { %v689_v28 = vsel %vm342_vm5, %v3320_v27, 0.0 }
 0x4e8   :  { %690 = vadd.xlane.f32.xlu1 %v689_v28 }
 0x4eb   :  { %v682_v29 = vpop.xlane.xlu0 %681 }
 0x4ec   :  { %v684_v31 = vsub.f32 %v674_v17, %v682_v29 }
 0x4ee   :  { %v687_v32 = vmul.f32 1.442695, %v684_v31 }
 0x4ef   :  { %v778_v30 = vpop.permute.xlu0 %777 }
 0x4f0   :  { %3142 = vmatpush3.msra.mxu1 %v778_v30  ;;  %3321 = vpow2.f32 %v687_v32 }
 0x4f1   :  { %3151 = vmatprep.subr.mxu1 %v3438_v10 }
 0x4f3   :  { %v854_v42 = vpop.permute.xlu0 %853 }
 0x4f9   :  { %701 = vrot.lane.b32.xlu1 %v3582_v47, %s3445_s22 }
 0x4fa   :  { %v3322_v33 = vpop.eup %3321 }
 0x4fb   :  { %v692_v34 = vsel %vm342_vm5, %v3322_v33, 0.0 }
 0x4fd   :  { %855 = vrot.lane.b32.xlu1 %v3552_v18, %s3447_s24 }
 0x501   :  { %933 = vrot.lane.b32.xlu1 %v3555_v19, %s3447_s24 }
 0x525   :  { %693 = vadd.xlane.f32.xlu1 %v692_v34 }
 0x536   :  { %931 = vrot.lane.b32.xlu1 %v3567_v25, %s3446_s23 }
 0x575   :  { %v691_v35 = vpop.xlane.xlu1 %690 }
 0x576   :  { %3323 = vrcp.f32 %v691_v35 }
 0x579   :  { %v702_v37 = vpop.permute.xlu1 %701 }
 0x57a   :  { %3137 = vmatpush3.msra.mxu0 %v702_v37 }
 0x57b   :  { %3146 = vmatprep.subr.mxu0 %v3438_v10 }
 0x57d   :  { %v856_v40 = vpop.permute.xlu1 %855 }
 0x580   :  { %v3324_v38 = vpop.eup %3323 }
 0x581   :  { %v3636_v39 = vmul.f32 %v3324_v38, %v3320_v27  ;;  %v934_v43 = vpop.permute.xlu1 %933 }
 0x583   :  { %3139 = vmatmul.mubr.msk.f32.vlgmr.msra.gmra.mrb[8].mxu0 %vm342_vm5, %v3636_v39  ;;  %v699_v17 = vadd.f32 %v3636_v39, %v3600_v3 }
 0x584   :  { %3147 = vmatpush3.xpose.msk.msra.mxu0 %vm188_vm2, %v856_v40  ;;  %3148 = vmatprep.mubr.msk.f32.mxu0 %vm3439_vm1, %v3438_v10 }
 0x585   :  { %3156 = vmatprep.subr.mxu0 %v3438_v10 }
 0x587   :  { %3149 = vmatmul.mubr.msk.f32.vlgmr.msra.gmra.mrb[10].mxu0 %vm188_vm2, %v854_v42 }
 0x588   :  { %3158 = vmatprep.mubr.msk.f32.mxu0 %vm3439_vm1, %v3438_v10 }
 0x5b2   :  { %v694_v44 = vpop.xlane.xlu1 %693 }
 0x5b3   :  { %3325 = vrcp.f32 %v694_v44 }
 0x5b6   :  { %v932_v49 = vpop.permute.xlu1 %931 }
 0x5bd   :  { %v3326_v45 = vpop.eup %3325 }
 0x5be   :  { %v3647_v46 = vmul.f32 %v3326_v45, %v3322_v33 }
 0x5c0   :  { %3144 = vmatmul.mubr.msk.f32.vlgmr.msra.gmra.mrb[10].mxu1 %vm342_vm5, %v3647_v46  ;;  %v700_v28 = vadd.f32 %v3647_v46, %v3606_v5 }
 0x5c1   :  { %3152 = vmatpush3.xpose.msk.msra.mxu1 %vm188_vm2, %v934_v43  ;;  %3153 = vmatprep.mubr.msk.f32.mxu1 %vm3439_vm1, %v3438_v10 }
 0x5c2   :  { %3161 = vmatprep.subr.mxu1 %v3438_v10 }
 0x5c4   :  { %3154 = vmatmul.mubr.msk.f32.vlgmr.msra.gmra.mrb[12].mxu1 %vm188_vm2, %v932_v49 }
 0x5c5   :  { %3163 = vmatprep.mubr.msk.f32.mxu1 %vm3439_vm1, %v3438_v10 }
 0x656   :  { %v3658_v50 = vpop.f32.mrb[8].mxu0 }
 0x657   :  { %v3140_v51 = vpop.f32.mrb[9].mxu0 }
 0x65a   :  { %v927_v52 = vpop.f32.mrb[10].mxu0 }
 0x65b   :  { %v928_v53 = vadd.f32 %v927_v52, %v3574_v36  ;;  %v3150_v54 = vpop.f32.mrb[11].mxu0 }
 0x65d   :  { %v1009_v55 = vsel %vm342_vm5, %v928_v53, -inf }
 0x65e   :  { %1010 = vmax.xlane.f32.xlu0 %v1009_v55 }
 0x693   :  { %v3662_v56 = vpop.f32.mrb[10].mxu1 }
 0x694   :  { %v3145_v57 = vpop.f32.mrb[11].mxu1 }
 0x697   :  { %v1005_v58 = vpop.f32.mrb[12].mxu1 }
 0x698   :  { %v1006_v59 = vadd.f32 %v1005_v58, %v3577_v41  ;;  %v3155_v60 = vpop.f32.mrb[13].mxu1 }
 0x69a   :  { %v1012_v61 = vsel %vm342_vm5, %v1006_v59, -inf }
 0x69b   :  { %1013 = vmax.xlane.f32.xlu1 %v1012_v61 }
 0x6ac   :  { %1033 = vrot.lane.b32.xlu1 %v3582_v47, %s3448_s25 }
 0x6b0   :  { %1187 = vrot.lane.b32.xlu1 %v3552_v18, %s3449_s26 }
 0x6b4   :  { %1265 = vrot.lane.b32.xlu1 %v3555_v19, %s3449_s26 }
 0x6b8   :  { %1263 = vrot.lane.b32.xlu1 %v3567_v25, %s3450_s3 }
 0x6eb   :  { %v1011_v62 = vpop.xlane.xlu0 %1010 }
 0x6ec   :  { %v1015_v63 = vsub.f32 %v928_v53, %v1011_v62 }
 0x6ee   :  { %v1017_v0 = vmul.f32 1.442695, %v1015_v63 }
 0x6f0   :  { %3327 = vpow2.f32 %v1017_v0 }
 0x6fa   :  { %v3328_v1 = vpop.eup %3327 }
 0x6fb   :  { %v1021_v2 = vsel %vm342_vm5, %v3328_v1, 0.0 }
 0x6fc   :  { %1022 = vadd.xlane.f32.xlu0 %v1021_v2 }
 0x712   :  { %1109 = vrot.lane.b32.xlu0 %v3584_v48, %s3448_s25 }
 0x728   :  { %v1014_v4 = vpop.xlane.xlu1 %1013 }
 0x729   :  { %v1016_v6 = vsub.f32 %v1006_v59, %v1014_v4 }
 0x72b   :  { %v1019_v7 = vmul.f32 1.442695, %v1016_v6 }
 0x72c   :  { %v1034_v8 = vpop.permute.xlu1 %1033 }
 0x72d   :  { %3329 = vpow2.f32 %v1019_v7  ;;  %3157 = vmatpush3.msra.mxu0 %v1034_v8 }
 0x72e   :  { %3166 = vmatprep.subr.mxu0 %v3438_v10 }
 0x730   :  { %v1188_v21 = vpop.permute.xlu1 %1187 }
 0x734   :  { %v1266_v27 = vpop.permute.xlu1 %1265 }
 0x737   :  { %v3330_v9 = vpop.eup %3329 }
 0x738   :  { %v1024_v11 = vsel %vm342_vm5, %v3330_v9, 0.0  ;;  %v1264_v31 = vpop.permute.xlu1 %1263 }
 0x739   :  { %1025 = vadd.xlane.f32.xlu0 %v1024_v11 }
 0x74f   :  { %1185 = vrot.lane.b32.xlu0 %v3559_v23, %s3450_s3 }
 0x789   :  { %v1023_v13 = vpop.xlane.xlu0 %1022 }
 0x78a   :  { %3331 = vrcp.f32 %v1023_v13 }
 0x78d   :  { %v1110_v15 = vpop.permute.xlu0 %1109 }
 0x78e   :  { %3162 = vmatpush3.msra.mxu1 %v1110_v15 }
 0x78f   :  { %3171 = vmatprep.subr.mxu1 %v3438_v10 }
 0x794   :  { %v3332_v16 = vpop.eup %3331 }
 0x795   :  { %v1028_v20 = vmul.f32 %v3332_v16, %v3328_v1 }
 0x797   :  { %v3678_v22 = vadd.f32 %v1028_v20, %v699_v17  ;;  %3159 = vmatmul.mubr.msk.f32.vlgmr.msra.gmra.mrb[12].mxu0 %vm342_vm5, %v1028_v20 }
 0x798   :  { %3167 = vmatpush3.xpose.msk.msra.mxu0 %vm188_vm2, %v1188_v21  ;;  %3168 = vmatprep.mubr.msk.f32.mxu0 %vm3439_vm1, %v3438_v10 }
 0x799   :  { %3176 = vmatprep.subr.mxu0 %v3438_v10 }
 0x7c6   :  { %v1026_v24 = vpop.xlane.xlu0 %1025 }
 0x7c7   :  { %3333 = vrcp.f32 %v1026_v24 }
 0x7ca   :  { %v1186_v26 = vpop.permute.xlu0 %1185 }
 0x7cb   :  { %3169 = vmatmul.mubr.msk.f32.vlgmr.msra.gmra.mrb[14].mxu0 %vm188_vm2, %v1186_v26 }
 0x7cc   :  { %3178 = vmatprep.mubr.msk.f32.mxu0 %vm3439_vm1, %v3438_v10 }
 0x7d1   :  { %v3334_v3 = vpop.eup %3333 }
 0x7d2   :  { %v1030_v29 = vmul.f32 %v3334_v3, %v3330_v9 }
 0x7d4   :  { %v3690_v30 = vadd.f32 %v1030_v29, %v700_v28  ;;  %3164 = vmatmul.mubr.msk.f32.vlgmr.msra.gmra.mrb[14].mxu1 %vm342_vm5, %v1030_v29 }
 0x7d5   :  { %3172 = vmatpush3.xpose.msk.msra.mxu1 %vm188_vm2, %v1266_v27  ;;  %3173 = vmatprep.mubr.msk.f32.mxu1 %vm3439_vm1, %v3438_v10 }
 0x7d6   :  { %3181 = vmatprep.subr.mxu1 %v3438_v10 }
 0x7d8   :  { %3174 = vmatmul.mubr.msk.f32.vlgmr.msra.gmra.mrb[16].mxu1 %vm188_vm2, %v1264_v31 }
 0x7d9   :  { %3183 = vmatprep.mubr.msk.f32.mxu1 %vm3439_vm1, %v3438_v10 }
 0x86a   :  { %v3700_v32 = vpop.f32.mrb[12].mxu0 }
 0x86b   :  { %v3160_v5 = vpop.f32.mrb[13].mxu0 }
 0x89e   :  { %v1259_v33 = vpop.f32.mrb[14].mxu0 }
 0x89f   :  { %v1260_v34 = vadd.f32 %v1259_v33, %v3574_v36  ;;  %v3170_v35 = vpop.f32.mrb[15].mxu0 }
 0x8a1   :  { %v1341_v37 = vsel %vm342_vm5, %v1260_v34, -inf }
 0x8a2   :  { %1342 = vmax.xlane.f32.xlu0 %v1341_v37 }
 0x8a7   :  { %v3704_v38 = vpop.f32.mrb[14].mxu1 }
 0x8a8   :  { %v3165_v39 = vpop.f32.mrb[15].mxu1 }
 0x8ab   :  { %v1337_v40 = vpop.f32.mrb[16].mxu1 }
 0x8ac   :  { %v1338_v42 = vadd.f32 %v1337_v40, %v3577_v41  ;;  %v3175_v43 = vpop.f32.mrb[17].mxu1 }
 0x8ae   :  { %v1344_v44 = vsel %vm342_vm5, %v1338_v42, -inf }
 0x8af   :  { %1345 = vmax.xlane.f32.xlu1 %v1344_v44 }
 0x8c0   :  { %1365 = vrot.lane.b32.xlu1 %v3582_v47, %s3451_s27 }
 0x8c4   :  { %1519 = vrot.lane.b32.xlu1 %v3552_v18, %s3452_s28 }
 0x8c8   :  { %1597 = vrot.lane.b32.xlu1 %v3555_v19, %s3452_s28 }
 0x8cc   :  { %1595 = vrot.lane.b32.xlu1 %v3567_v25, %s3453_s29 }
 0x92f   :  { %v1343_v45 = vpop.xlane.xlu0 %1342 }
 0x930   :  { %v1347_v46 = vsub.f32 %v1260_v34, %v1343_v45 }
 0x932   :  { %v1349_v49 = vmul.f32 1.442695, %v1347_v46 }
 0x934   :  { %3335 = vpow2.f32 %v1349_v49 }
 0x93c   :  { %v1346_v51 = vpop.xlane.xlu1 %1345 }
 0x93d   :  { %v1348_v55 = vsub.f32 %v1338_v42, %v1346_v51 }
 0x93e   :  { %v3336_v52 = vpop.eup %3335 }
 0x93f   :  { %v1353_v53 = vsel %vm342_vm5, %v3336_v52, 0.0  ;;  %v1351_v57 = vmul.f32 1.442695, %v1348_v55 }
 0x940   :  { %1354 = vadd.xlane.f32.xlu0 %v1353_v53  ;;  %v1366_v54 = vpop.permute.xlu1 %1365 }
 0x941   :  { %3177 = vmatpush3.msra.mxu0 %v1366_v54  ;;  %3337 = vpow2.f32 %v1351_v57 }
 0x942   :  { %3186 = vmatprep.subr.mxu0 %v3438_v10 }
 0x944   :  { %v1520_v0 = vpop.permute.xlu1 %1519 }
 0x948   :  { %v1598_v7 = vpop.permute.xlu1 %1597 }
 0x94b   :  { %v3338_v58 = vpop.eup %3337 }
 0x94c   :  { %v1356_v59 = vsel %vm342_vm5, %v3338_v58, 0.0  ;;  %v1596_v11 = vpop.permute.xlu1 %1595 }
 0x956   :  { %1441 = vrot.lane.b32.xlu0 %v3584_v48, %s3451_s27 }
 0x975   :  { %1357 = vadd.xlane.f32.xlu0 %v1356_v59 }
 0x98b   :  { %1517 = vrot.lane.b32.xlu0 %v3559_v23, %s3453_s29 }
 0x9cd   :  { %v1355_v60 = vpop.xlane.xlu0 %1354 }
 0x9ce   :  { %3339 = vrcp.f32 %v1355_v60 }
 0x9d1   :  { %v1442_v61 = vpop.permute.xlu0 %1441 }
 0x9d2   :  { %3182 = vmatpush3.msra.mxu1 %v1442_v61 }
 0x9d3   :  { %3191 = vmatprep.subr.mxu1 %v3438_v10 }
 0x9d8   :  { %v3340_v62 = vpop.eup %3339 }
 0x9d9   :  { %v1360_v63 = vmul.f32 %v3340_v62, %v3336_v52 }
 0x9db   :  { %v3719_v1 = vadd.f32 %v1360_v63, %v3678_v22  ;;  %3179 = vmatmul.mubr.msk.f32.vlgmr.msra.gmra.mrb[16].mxu0 %vm342_vm5, %v1360_v63 }
 0x9dc   :  { %3187 = vmatpush3.xpose.msk.msra.mxu0 %vm188_vm2, %v1520_v0  ;;  %3188 = vmatprep.mubr.msk.f32.mxu0 %vm3439_vm1, %v3438_v10 }
 0x9dd   :  { %3196 = vmatprep.subr.mxu0 %v3438_v10 }
 0xa02   :  { %v1358_v2 = vpop.xlane.xlu0 %1357 }
 0xa03   :  { %3341 = vrcp.f32 %v1358_v2 }
 0xa06   :  { %v1518_v4 = vpop.permute.xlu0 %1517 }
 0xa07   :  { %3189 = vmatmul.mubr.msk.f32.vlgmr.msra.gmra.mrb[18].mxu0 %vm188_vm2, %v1518_v4 }
 0xa08   :  { %3198 = vmatprep.mubr.msk.f32.mxu0 %vm3439_vm1, %v3438_v10 }
 0xa0d   :  { %v3342_v6 = vpop.eup %3341 }
 0xa0e   :  { %v1362_v8 = vmul.f32 %v3342_v6, %v3338_v58 }
 0xa10   :  { %v3730_v9 = vadd.f32 %v1362_v8, %v3690_v30  ;;  %3184 = vmatmul.mubr.msk.f32.vlgmr.msra.gmra.mrb[18].mxu1 %vm342_vm5, %v1362_v8 }
 0xa11   :  { %3192 = vmatpush3.xpose.msk.msra.mxu1 %vm188_vm2, %v1598_v7  ;;  %3193 = vmatprep.mubr.msk.f32.mxu1 %vm3439_vm1, %v3438_v10 }
 0xa12   :  { %3201 = vmatprep.subr.mxu1 %v3438_v10 }
 0xa14   :  { %3194 = vmatmul.mubr.msk.f32.vlgmr.msra.gmra.mrb[20].mxu1 %vm188_vm2, %v1596_v11 }
 0xa15   :  { %3203 = vmatprep.mubr.msk.f32.mxu1 %vm3439_vm1, %v3438_v10 }
 0xaae   :  { %v3740_v13 = vpop.f32.mrb[16].mxu0 }
 0xaaf   :  { %v3180_v15 = vpop.f32.mrb[17].mxu0 }
 0xada   :  { %v1591_v16 = vpop.f32.mrb[18].mxu0 }
 0xadb   :  { %v1592_v17 = vadd.f32 %v1591_v16, %v3574_v36  ;;  %v3190_v20 = vpop.f32.mrb[19].mxu0 }
 0xadd   :  { %v1673_v21 = vsel %vm342_vm5, %v1592_v17, -inf }
 0xade   :  { %1674 = vmax.xlane.f32.xlu0 %v1673_v21 }
 0xae3   :  { %v3744_v22 = vpop.f32.mrb[18].mxu1 }
 0xae4   :  { %v3185_v24 = vpop.f32.mrb[19].mxu1 }
 0xae7   :  { %v1669_v26 = vpop.f32.mrb[20].mxu1 }
 0xae8   :  { %v1670_v3 = vadd.f32 %v1669_v26, %v3577_v41  ;;  %v3195_v27 = vpop.f32.mrb[21].mxu1 }
 0xaea   :  { %v1676_v28 = vsel %vm342_vm5, %v1670_v3, -inf }
 0xaeb   :  { %1677 = vmax.xlane.f32.xlu1 %v1676_v28 }
 0xafc   :  { %1697 = vrot.lane.b32.xlu1 %v3582_v47, %s3454_s30 }
 0xb00   :  { %1851 = vrot.lane.b32.xlu1 %v3552_v18, %s3455_s6 }
 0xb04   :  { %1929 = vrot.lane.b32.xlu1 %v3555_v19, %s3455_s6 }
 0xb08   :  { %1927 = vrot.lane.b32.xlu1 %v3567_v25, %s3456_s7 }
 0xb6b   :  { %v1675_v29 = vpop.xlane.xlu0 %1674 }
 0xb6c   :  { %v1679_v30 = vsub.f32 %v1592_v17, %v1675_v29 }
 0xb6e   :  { %v1681_v31 = vmul.f32 1.442695, %v1679_v30 }
 0xb70   :  { %3343 = vpow2.f32 %v1681_v31 }
 0xb78   :  { %v1678_v5 = vpop.xlane.xlu1 %1677 }
 0xb79   :  { %v1680_v37 = vsub.f32 %v1670_v3, %v1678_v5 }
 0xb7a   :  { %v3344_v33 = vpop.eup %3343 }
 0xb7b   :  { %v1685_v34 = vsel %vm342_vm5, %v3344_v33, 0.0  ;;  %v1683_v39 = vmul.f32 1.442695, %v1680_v37 }
 0xb7c   :  { %1686 = vadd.xlane.f32.xlu0 %v1685_v34  ;;  %v1698_v35 = vpop.permute.xlu1 %1697 }
 0xb7d   :  { %3197 = vmatpush3.msra.mxu0 %v1698_v35  ;;  %3345 = vpow2.f32 %v1683_v39 }
 0xb7e   :  { %3206 = vmatprep.subr.mxu0 %v3438_v10 }
 0xb80   :  { %v1852_v49 = vpop.permute.xlu1 %1851 }
 0xb84   :  { %v1930_v55 = vpop.permute.xlu1 %1929 }
 0xb87   :  { %v3346_v40 = vpop.eup %3345 }
 0xb88   :  { %v1688_v42 = vsel %vm342_vm5, %v3346_v40, 0.0  ;;  %v1928_v59 = vpop.permute.xlu1 %1927 }
 0xb92   :  { %1773 = vrot.lane.b32.xlu0 %v3584_v48, %s3454_s30 }
 0xbb1   :  { %1689 = vadd.xlane.f32.xlu0 %v1688_v42 }
 0xbc7   :  { %1849 = vrot.lane.b32.xlu0 %v3559_v23, %s3456_s7 }
 0xc09   :  { %v1687_v43 = vpop.xlane.xlu0 %1686 }
 0xc0a   :  { %3347 = vrcp.f32 %v1687_v43 }
 0xc0d   :  { %v1774_v44 = vpop.permute.xlu0 %1773 }
 0xc0e   :  { %3202 = vmatpush3.msra.mxu1 %v1774_v44 }
 0xc0f   :  { %3211 = vmatprep.subr.mxu1 %v3438_v10 }
 0xc14   :  { %v3348_v45 = vpop.eup %3347 }
 0xc15   :  { %v1692_v46 = vmul.f32 %v3348_v45, %v3344_v33 }
 0xc17   :  { %v3759_v51 = vadd.f32 %v1692_v46, %v3719_v1  ;;  %3199 = vmatmul.mubr.msk.f32.vlgmr.msra.gmra.mrb[20].mxu0 %vm342_vm5, %v1692_v46 }
 0xc18   :  { %3207 = vmatpush3.xpose.msk.msra.mxu0 %vm188_vm2, %v1852_v49  ;;  %3208 = vmatprep.mubr.msk.f32.mxu0 %vm3439_vm1, %v3438_v10 }
 0xc19   :  { %3216 = vmatprep.subr.mxu0 %v3438_v10 }
 0xc3e   :  { %v1690_v52 = vpop.xlane.xlu0 %1689 }
 0xc3f   :  { %3349 = vrcp.f32 %v1690_v52 }
 0xc42   :  { %v1850_v53 = vpop.permute.xlu0 %1849 }
 0xc43   :  { %3209 = vmatmul.mubr.msk.f32.vlgmr.msra.gmra.mrb[22].mxu0 %vm188_vm2, %v1850_v53 }
 0xc44   :  { %3218 = vmatprep.mubr.msk.f32.mxu0 %vm3439_vm1, %v3438_v10 }
 0xc49   :  { %v3350_v54 = vpop.eup %3349 }
 0xc4a   :  { %v1694_v57 = vmul.f32 %v3350_v54, %v3346_v40 }
 0xc4c   :  { %v3770_v58 = vadd.f32 %v1694_v57, %v3730_v9  ;;  %3204 = vmatmul.mubr.msk.f32.vlgmr.msra.gmra.mrb[22].mxu1 %vm342_vm5, %v1694_v57 }
 0xc4d   :  { %3212 = vmatpush3.xpose.msk.msra.mxu1 %vm188_vm2, %v1930_v55  ;;  %3213 = vmatprep.mubr.msk.f32.mxu1 %vm3439_vm1, %v3438_v10 }
 0xc4e   :  { %3221 = vmatprep.subr.mxu1 %v3438_v10 }
 0xc50   :  { %3214 = vmatmul.mubr.msk.f32.vlgmr.msra.gmra.mrb[24].mxu1 %vm188_vm2, %v1928_v59 }
 0xc51   :  { %3223 = vmatprep.mubr.msk.f32.mxu1 %vm3439_vm1, %v3438_v10 }
 0xcea   :  { %v3780_v60 = vpop.f32.mrb[20].mxu0 }
 0xceb   :  { %v3200_v61 = vpop.f32.mrb[21].mxu0 }
 0xd16   :  { %v1923_v62 = vpop.f32.mrb[22].mxu0 }
 0xd17   :  { %v1924_v63 = vadd.f32 %v1923_v62, %v3574_v36  ;;  %v3210_v0 = vpop.f32.mrb[23].mxu0 }
 0xd19   :  { %v2005_v1 = vsel %vm342_vm5, %v1924_v63, -inf }
 0xd1a   :  { %2006 = vmax.xlane.f32.xlu0 %v2005_v1 }
 0xd1f   :  { %v3784_v2 = vpop.f32.mrb[22].mxu1 }
 0xd20   :  { %v3205_v4 = vpop.f32.mrb[23].mxu1 }
 0xd23   :  { %v2001_v6 = vpop.f32.mrb[24].mxu1 }
 0xd24   :  { %v2002_v7 = vadd.f32 %v2001_v6, %v3577_v41  ;;  %v3215_v8 = vpop.f32.mrb[25].mxu1 }
 0xd26   :  { %v2008_v9 = vsel %vm342_vm5, %v2002_v7, -inf }
 0xd27   :  { %2009 = vmax.xlane.f32.xlu1 %v2008_v9 }
 0xd38   :  { %2029 = vrot.lane.b32.xlu1 %v3582_v47, %s3457_s8 }
 0xd3c   :  { %2183 = vrot.lane.b32.xlu1 %v3552_v18, %s3458_s9 }
 0xd40   :  { %2261 = vrot.lane.b32.xlu1 %v3555_v19, %s3458_s9 }
 0xd44   :  { %2259 = vrot.lane.b32.xlu1 %v3567_v25, %s3459_s10 }
 0xda7   :  { %v2007_v11 = vpop.xlane.xlu0 %2006 }
 0xda8   :  { %v2011_v15 = vsub.f32 %v1924_v63, %v2007_v11 }
 0xdaa   :  { %v2013_v16 = vmul.f32 1.442695, %v2011_v15 }
 0xdac   :  { %3351 = vpow2.f32 %v2013_v16 }
 0xdb4   :  { %v2010_v17 = vpop.xlane.xlu1 %2009 }
 0xdb5   :  { %v2012_v26 = vsub.f32 %v2002_v7, %v2010_v17 }
 0xdb6   :  { %v3352_v20 = vpop.eup %3351 }
 0xdb7   :  { %v2017_v21 = vsel %vm342_vm5, %v3352_v20, 0.0  ;;  %v2015_v3 = vmul.f32 1.442695, %v2012_v26 }
 0xdb8   :  { %2018 = vadd.xlane.f32.xlu0 %v2017_v21  ;;  %v2030_v24 = vpop.permute.xlu1 %2029 }
 0xdb9   :  { %3217 = vmatpush3.msra.mxu0 %v2030_v24  ;;  %3353 = vpow2.f32 %v2015_v3 }
 0xdba   :  { %3226 = vmatprep.subr.mxu0 %v3438_v10 }
 0xdbc   :  { %v2184_v33 = vpop.permute.xlu1 %2183 }
 0xdc0   :  { %v2262_v40 = vpop.permute.xlu1 %2261 }
 0xdc3   :  { %v3354_v27 = vpop.eup %3353 }
 0xdc4   :  { %v2020_v28 = vsel %vm342_vm5, %v3354_v27, 0.0  ;;  %v2260_v44 = vpop.permute.xlu1 %2259 }
 0xdce   :  { %2105 = vrot.lane.b32.xlu0 %v3584_v48, %s3457_s8 }
 0xded   :  { %2021 = vadd.xlane.f32.xlu0 %v2020_v28 }
 0xe03   :  { %2181 = vrot.lane.b32.xlu0 %v3559_v23, %s3459_s10 }
 0xe45   :  { %v2019_v29 = vpop.xlane.xlu0 %2018 }
 0xe46   :  { %3355 = vrcp.f32 %v2019_v29 }
 0xe49   :  { %v2106_v30 = vpop.permute.xlu0 %2105 }
 0xe4a   :  { %3222 = vmatpush3.msra.mxu1 %v2106_v30 }
 0xe4b   :  { %3231 = vmatprep.subr.mxu1 %v3438_v10 }
 0xe50   :  { %v3356_v31 = vpop.eup %3355 }
 0xe51   :  { %v2024_v5 = vmul.f32 %v3356_v31, %v3352_v20 }
 0xe53   :  { %3219 = vmatmul.mubr.msk.f32.vlgmr.msra.gmra.mrb[24].mxu0 %vm342_vm5, %v2024_v5  ;;  %v3800_v34 = vadd.f32 %v2024_v5, %v3759_v51 }
 0xe54   :  { %3227 = vmatpush3.xpose.msk.msra.mxu0 %vm188_vm2, %v2184_v33  ;;  %3228 = vmatprep.mubr.msk.f32.mxu0 %vm3439_vm1, %v3438_v10 }
 0xe55   :  { %3236 = vmatprep.subr.mxu0 %v3438_v10 }
 0xe7a   :  { %v2022_v35 = vpop.xlane.xlu0 %2021 }
 0xe7b   :  { %3357 = vrcp.f32 %v2022_v35 }
 0xe7e   :  { %v2182_v37 = vpop.permute.xlu0 %2181 }
 0xe7f   :  { %3229 = vmatmul.mubr.msk.f32.vlgmr.msra.gmra.mrb[26].mxu0 %vm188_vm2, %v2182_v37 }
 0xe80   :  { %3238 = vmatprep.mubr.msk.f32.mxu0 %vm3439_vm1, %v3438_v10 }
 0xe85   :  { %v3358_v39 = vpop.eup %3357 }
 0xe86   :  { %v2026_v42 = vmul.f32 %v3358_v39, %v3354_v27 }
 0xe88   :  { %3224 = vmatmul.mubr.msk.f32.vlgmr.msra.gmra.mrb[26].mxu1 %vm342_vm5, %v2026_v42  ;;  %v3811_v43 = vadd.f32 %v2026_v42, %v3770_v58 }
 0xe89   :  { %3232 = vmatpush3.xpose.msk.msra.mxu1 %vm188_vm2, %v2262_v40  ;;  %3233 = vmatprep.mubr.msk.f32.mxu1 %vm3439_vm1, %v3438_v10 }
 0xe8a   :  { %3241 = vmatprep.subr.mxu1 %v3438_v10 }
 0xe8c   :  { %3234 = vmatmul.mubr.msk.f32.vlgmr.msra.gmra.mrb[28].mxu1 %vm188_vm2, %v2260_v44 }
 0xe8d   :  { %3243 = vmatprep.mubr.msk.f32.mxu1 %vm3439_vm1, %v3438_v10 }
 0xf26   :  { %v3820_v45 = vpop.f32.mrb[24].mxu0 }
 0xf27   :  { %v3220_v46 = vpop.f32.mrb[25].mxu0 }
 0xf52   :  { %v2255_v49 = vpop.f32.mrb[26].mxu0 }
 0xf53   :  { %v2256_v51 = vadd.f32 %v2255_v49, %v3574_v36  ;;  %v3230_v52 = vpop.f32.mrb[27].mxu0 }
 0xf55   :  { %v2337_v53 = vsel %vm342_vm5, %v2256_v51, -inf }
 0xf56   :  { %2338 = vmax.xlane.f32.xlu0 %v2337_v53 }
 0xf5b   :  { %v3824_v54 = vpop.f32.mrb[26].mxu1 }
 0xf5c   :  { %v3225_v55 = vpop.f32.mrb[27].mxu1 }
 0xf5f   :  { %v2333_v57 = vpop.f32.mrb[28].mxu1 }
 0xf60   :  { %v2334_v58 = vadd.f32 %v2333_v57, %v3577_v41  ;;  %v3235_v59 = vpop.f32.mrb[29].mxu1 }
 0xf62   :  { %v2340_v61 = vsel %vm342_vm5, %v2334_v58, -inf }
 0xf63   :  { %2341 = vmax.xlane.f32.xlu1 %v2340_v61 }
 0xf74   :  { %2361 = vrot.lane.b32.xlu1 %v3582_v47, %s3460_s1 }
 0xf78   :  { %2515 = vrot.lane.b32.xlu1 %v3552_v18, %s3461_s11 }
 0xf7c   :  { %2593 = vrot.lane.b32.xlu1 %v3555_v19, %s3461_s11 }
 0xf80   :  { %2591 = vrot.lane.b32.xlu1 %v3567_v25, %s3462_s12 }
 0xfe3   :  { %v2339_v62 = vpop.xlane.xlu0 %2338 }
 0xfe4   :  { %v2343_v63 = vsub.f32 %v2256_v51, %v2339_v62 }
 0xfe6   :  { %v2345_v0 = vmul.f32 1.442695, %v2343_v63 }
 0xfe8   :  { %3359 = vpow2.f32 %v2345_v0 }
 0xff0   :  { %v2342_v1 = vpop.xlane.xlu1 %2341 }
 0xff1   :  { %v2344_v18 = vsub.f32 %v2334_v58, %v2342_v1 }
 0xff2   :  { %v3360_v4 = vpop.eup %3359 }
 0xff3   :  { %v2349_v6 = vsel %vm342_vm5, %v3360_v4, 0.0  ;;  %v2347_v19 = vmul.f32 1.442695, %v2344_v18 }
 0xff4   :  { %2350 = vadd.xlane.f32.xlu0 %v2349_v6  ;;  %v2362_v7 = vpop.permute.xlu1 %2361 }
 0xff5   :  { %3237 = vmatpush3.msra.mxu0 %v2362_v7  ;;  %3361 = vpow2.f32 %v2347_v19 }
 0xff6   :  { %3246 = vmatprep.subr.mxu0 %v3438_v10 }
 0xff8   :  { %v2516_v17 = vpop.permute.xlu1 %2515 }
 0xffc   :  { %v2594_v26 = vpop.permute.xlu1 %2593 }
 0xfff   :  { %v3362_v8 = vpop.eup %3361 }
0x1000   :  { %v2352_v25 = vsel %vm342_vm5, %v3362_v8, 0.0  ;;  %v2592_v28 = vpop.permute.xlu1 %2591 }
0x100a   :  { %2437 = vrot.lane.b32.xlu0 %v3584_v48, %s3460_s1 }
0x1029   :  { %2353 = vadd.xlane.f32.xlu0 %v2352_v25 }
0x103f   :  { %2513 = vrot.lane.b32.xlu0 %v3559_v23, %s3462_s12 }
0x1081   :  { %v2351_v9 = vpop.xlane.xlu0 %2350 }
0x1082   :  { %3363 = vrcp.f32 %v2351_v9 }
0x1085   :  { %v2438_v11 = vpop.permute.xlu0 %2437 }
0x1086   :  { %3242 = vmatpush3.msra.mxu1 %v2438_v11 }
0x1087   :  { %3251 = vmatprep.subr.mxu1 %v3438_v10 }
0x108c   :  { %v3364_v15 = vpop.eup %3363 }
0x108d   :  { %v2356_v16 = vmul.f32 %v3364_v15, %v3360_v4 }
0x108f   :  { %3239 = vmatmul.mubr.msk.f32.vlgmr.msra.gmra.mrb[28].mxu0 %vm342_vm5, %v2356_v16  ;;  %v3840_v20 = vadd.f32 %v2356_v16, %v3800_v34 }
0x1090   :  { %3247 = vmatpush3.xpose.msk.msra.mxu0 %vm188_vm2, %v2516_v17  ;;  %3248 = vmatprep.mubr.msk.f32.mxu0 %vm3439_vm1, %v3438_v10 }
0x1091   :  { %3256 = vmatprep.subr.mxu0 %v3438_v10 }
0x10b6   :  { %v2354_v23 = vpop.xlane.xlu0 %2353 }
0x10b7   :  { %3365 = vrcp.f32 %v2354_v23 }
0x10ba   :  { %v2514_v21 = vpop.permute.xlu0 %2513 }
0x10bb   :  { %3249 = vmatmul.mubr.msk.f32.vlgmr.msra.gmra.mrb[30].mxu0 %vm188_vm2, %v2514_v21 }
0x10bc   :  { %3258 = vmatprep.mubr.msk.f32.mxu0 %vm3439_vm1, %v3438_v10 }
0x10c1   :  { %v3366_v24 = vpop.eup %3365 }
0x10c2   :  { %v2358_v3 = vmul.f32 %v3366_v24, %v3362_v8 }
0x10c4   :  { %3244 = vmatmul.mubr.msk.f32.vlgmr.msra.gmra.mrb[30].mxu1 %vm342_vm5, %v2358_v3  ;;  %v3851_v27 = vadd.f32 %v2358_v3, %v3811_v43 }
0x10c5   :  { %3252 = vmatpush3.xpose.msk.msra.mxu1 %vm188_vm2, %v2594_v26  ;;  %3253 = vmatprep.mubr.msk.f32.mxu1 %vm3439_vm1, %v3438_v10 }
0x10c6   :  { %3261 = vmatprep.subr.mxu1 %v3438_v10 }
0x10c8   :  { %3254 = vmatmul.mubr.msk.f32.vlgmr.msra.gmra.mrb[32].mxu1 %vm188_vm2, %v2592_v28 }
0x10c9   :  { %3263 = vmatprep.mubr.msk.f32.mxu1 %vm3439_vm1, %v3438_v10 }
0x1162   :  { %v2433_v29 = vpop.f32.mrb[28].mxu0 }
0x1163   :  { %v3240_v30 = vpop.f32.mrb[29].mxu0 }
0x118e   :  { %v2587_v31 = vpop.f32.mrb[30].mxu0 }
0x118f   :  { %v2588_v5 = vadd.f32 %v2587_v31, %v3574_v36  ;;  %v3250_v33 = vpop.f32.mrb[31].mxu0 }
0x1191   :  { %v2669_v34 = vsel %vm342_vm5, %v2588_v5, -inf }
0x1192   :  { %2670 = vmax.xlane.f32.xlu0 %v2669_v34 }
0x1197   :  { %v2509_v35 = vpop.f32.mrb[30].mxu1 }
0x1198   :  { %v3245_v37 = vpop.f32.mrb[31].mxu1 }
0x119b   :  { %v2665_v39 = vpop.f32.mrb[32].mxu1 }
0x119c   :  { %v2666_v40 = vadd.f32 %v2665_v39, %v3577_v41  ;;  %v3255_v42 = vpop.f32.mrb[33].mxu1 }
0x119e   :  { %v2672_v43 = vsel %vm342_vm5, %v2666_v40, -inf }
0x119f   :  { %2673 = vmax.xlane.f32.xlu1 %v2672_v43 }
0x11b0   :  { %2693 = vrot.lane.b32.xlu1 %v3582_v47, %s3463_s13 }
0x11b4   :  { %2847 = vrot.lane.b32.xlu1 %v3658_v50, %s3464_s14 }
0x11b8   :  { %2849 = vrot.lane.b32.xlu1 %v3662_v56, %s3464_s14 }
0x11bc   :  { %2857 = vrot.lane.b32.xlu1 %v3704_v38, %s3465_s15 }
0x11c0   :  { %2865 = vrot.lane.b32.xlu1 %v3744_v22, %s3466_s16 }
0x11c4   :  { %2873 = vrot.lane.b32.xlu1 %v3784_v2, %s3467_s17 }
0x11c8   :  { %2881 = vrot.lane.b32.xlu1 %v3824_v54, %s3468_s18 }
0x11cc   :  { %2889 = vrot.lane.b32.xlu1 %v2509_v35, %s3469_s0 }
0x121f   :  { %v2671_v10 = vpop.xlane.xlu0 %2670 }
0x1220   :  { %v2675_v36 = vsub.f32 %v2588_v5, %v2671_v10 }
0x1222   :  { %v2677_v41 = vmul.f32 1.442695, %v2675_v36 }
0x1224   :  { %3367 = vpow2.f32 %v2677_v41 }
0x122c   :  { %v2674_v47 = vpop.xlane.xlu1 %2673 }
0x122d   :  { %v2676_v50 = vsub.f32 %v2666_v40, %v2674_v47 }
0x122e   :  { %v3368_v56 = vpop.eup %3367 }
0x122f   :  { %v2679_v44 = vmul.f32 1.442695, %v2676_v50  ;;  %v2681_v38 = vsel %vm342_vm5, %v3368_v56, 0.0 }
0x1230   :  { %2682 = vadd.xlane.f32.xlu0 %v2681_v38  ;;  %v2694_v22 = vpop.permute.xlu1 %2693 }
0x1231   :  { %3369 = vpow2.f32 %v2679_v44  ;;  %3257 = vmatpush3.msra.mxu0 %v2694_v22 }
0x123b   :  { %v3370_v2 = vpop.eup %3369 }
0x123c   :  { %v2684_v46 = vsel %vm342_vm5, %v3370_v2, 0.0 }
0x123d   :  { %2685 = vadd.xlane.f32.xlu0 %v2684_v46 }
0x1253   :  { %2769 = vrot.lane.b32.xlu0 %v3584_v48, %s3463_s13 }
0x1257   :  { %2855 = vrot.lane.b32.xlu0 %v3700_v32, %s3465_s15 }
0x125b   :  { %2863 = vrot.lane.b32.xlu0 %v3740_v13, %s3466_s16 }
0x125f   :  { %2871 = vrot.lane.b32.xlu0 %v3780_v60, %s3467_s17 }
0x1263   :  { %2879 = vrot.lane.b32.xlu0 %v3820_v45, %s3468_s18 }
0x1267   :  { %2887 = vrot.lane.b32.xlu0 %v2433_v29, %s3469_s0 }
0x12bd   :  { %v2683_v49 = vpop.xlane.xlu0 %2682 }
0x12be   :  { %3371 = vrcp.f32 %v2683_v49 }
0x12c8   :  { %v3372_v51 = vpop.eup %3371 }
0x12c9   :  { %v2688_v52 = vmul.f32 %v3372_v51, %v3368_v56 }
0x12ca   :  { %v2686_v53 = vpop.xlane.xlu0 %2685 }
0x12cb   :  { %3373 = vrcp.f32 %v2686_v53  ;;  %3259 = vmatmul.mubr.msk.f32.vlgmr.msra.gmra.mrb[32].mxu0 %vm342_vm5, %v2688_v52  ;;  %v2691_v48 = vadd.f32 %v2688_v52, %v3840_v20 }
0x12cd   :  { %v2922_v54 = vmul.f32 0.125, %v2691_v48 }
0x12ce   :  { %v2770_v55 = vpop.permute.xlu0 %2769 }
0x12cf   :  { %3262 = vmatpush3.msra.mxu1 %v2770_v55  ;;  %2924 = vst.msk [vmem:[#allocation6] sm:$0xff] %vm342_vm5, %v2922_v54 }
0x12d5   :  { %v3374_v32 = vpop.eup %3373 }
0x12d6   :  { %v2690_v13 = vmul.f32 %v3374_v32, %v3370_v2 }
0x12d8   :  { %3264 = vmatmul.mubr.msk.f32.vlgmr.msra.gmra.mrb[34].mxu1 %vm342_vm5, %v2690_v13  ;;  %v2692_v60 = vadd.f32 %v2690_v13, %v3851_v27 }
0x12da   :  { %v2923_v45 = vmul.f32 0.125, %v2692_v60 }
0x12dc   :  { %2925 = vst.msk [vmem:[#allocation6 + $0x8] sm:$0xff] %vm342_vm5, %v2923_v45 }
0x139e   :  { %v2765_v57 = vpop.f32.mrb[32].mxu0 }
0x139f   :  { %2895 = vrot.lane.b32.xlu0 %v2765_v57, %s3470_s2  ;;  %v3260_v58 = vpop.f32.mrb[33].mxu0 }
0x13a0   :  { %3398 = shalt.err (!%p3395_p9)
}
0x13a1   :  { %s3399_s24 = scalar_lea.hbm %s3939_s5, 256 }
0x13a2   :  { %p3400_p10 = scmp.ne.s32.totalorder %s3939_s5, %s3399_s24  ;;  %p3403_p11 = scmp.lt.u32.totalorder %s3399_s24, %s3939_s5 }
0x13a4   :  { %p3405_p12 = pnand %p3403_p11, %p3400_p10 }
0x13a6   :  { %3408 = shalt.err (!%p3405_p12)
}
0x13a7   :  { %s3472_s28 = smov 128   ;;  %v2856_v62 = vpop.permute.xlu0 %2855  ;;  %v2848_v63 = vpop.permute.xlu1 %2847  ;;  %vm2905_vm6 = vcmask 97280   ;;  %vm2908_vm7 = vcmask 130048   ;;  %vm2911_vm8 = vcmask 162816   ;;  %vm2917_vm9 = vcmask 228352  }
0x13a8   :  { %2949 = dma.vmem_to_hbm [thread:$0]  %s2944_s20, 256, %s3939_s5, [#allocation7], %s3472_s28, %s3472_s28, %s3465_s15   ;;  %v2901_v19 = vsel %vm188_vm2, %v3620_v12, %v2848_v63  ;;  %vm2914_vm10 = vcmask 195584  }
0x13a9   :  { %v2903_v8 = vsel %vm342_vm5, %v2901_v19, %v2856_v62  ;;  %s3473_s5 = smov [#allocation5]  }
0x13aa   :  { %s2931_s6 = sshll.u32 %s3473_s5, 4  ;;  %s2932_s6 = int_to_ptr.vmem [resolvable:$true] %s2931_s6 }
0x13ab   :  { %v2841_v59 = vpop.f32.mrb[34].mxu1  ;;  %v2864_v0 = vpop.permute.xlu0 %2863  ;;  %s3409_s7 = scalar_lea.vmem %s2932_s6, 256  ;;  %p3414_p0 = scmp.lt.s32.totalorder %s2932_s6, %s2932_s6 }
0x13ac   :  { %2897 = vrot.lane.b32.xlu1 %v2841_v59, %s3470_s2  ;;  %v3265_v61 = vpop.f32.mrb[35].mxu1  ;;  %v2850_v1 = vpop.permute.xlu1 %2849  ;;  %v2906_v11 = vsel %vm2905_vm6, %v2903_v8, %v2864_v0  ;;  %p3410_p13 = scmp.ne.s32.totalorder %s2932_s6, %s3409_s7  ;;  %p3415_p1 = scmp.lt.s32.totalorder %s3409_s7, %s3409_s7 }
0x13ad   :  { %v2902_v21 = vsel %vm188_vm2, %v3622_v14, %v2850_v1 }
0x13ae   :  { %p3416_p2 = por %p3415_p1, %p3414_p0 }
0x13af   :  { %v2872_v4 = vpop.permute.xlu0 %2871 }
0x13b0   :  { %v2858_v6 = vpop.permute.xlu1 %2857  ;;  %v2909_v15 = vsel %vm2908_vm7, %v2906_v11, %v2872_v4  ;;  %p3417_p3 = pnand %p3416_p2, %p3410_p13 }
0x13b1   :  { %v2904_v24 = vsel %vm342_vm5, %v2902_v21, %v2858_v6 }
0x13b3   :  { %v2880_v7 = vpop.permute.xlu0 %2879 }
0x13b4   :  { %v2866_v18 = vpop.permute.xlu1 %2865  ;;  %v2912_v16 = vsel %vm2911_vm8, %v2909_v15, %v2880_v7 }
0x13b5   :  { %v2907_v3 = vsel %vm2905_vm6, %v2904_v24, %v2866_v18 }
0x13b7   :  { %v2888_v25 = vpop.permute.xlu0 %2887 }
0x13b8   :  { %v2874_v9 = vpop.permute.xlu1 %2873  ;;  %v2915_v17 = vsel %vm2914_vm10, %v2912_v16, %v2888_v25 }
0x13b9   :  { %v2910_v27 = vsel %vm2908_vm7, %v2907_v3, %v2874_v9 }
0x13bc   :  { %v2882_v12 = vpop.permute.xlu1 %2881 }
0x13bd   :  { %v2913_v28 = vsel %vm2911_vm8, %v2910_v27, %v2882_v12 }
0x13c0   :  { %v2890_v26 = vpop.permute.xlu1 %2889 }
0x13c1   :  { %v2916_v29 = vsel %vm2914_vm10, %v2913_v28, %v2890_v26 }
0x1411   :  { %v2896_v20 = vpop.permute.xlu0 %2895 }
0x1412   :  { %v2918_v23 = vsel %vm2917_vm9, %v2915_v17, %v2896_v20 }
0x1413   :  { %2920 = vst.msk [vmem:[#allocation5] sm:$0xff] %vm51_vm0, %v2918_v23 }
0x141e   :  { %v2898_v30 = vpop.permute.xlu1 %2897 }
0x141f   :  { %v2919_v31 = vsel %vm2917_vm9, %v2916_v29, %v2898_v30 }
0x1420   :  { %2921 = vst.msk [vmem:[#allocation5 + $0x8] sm:$0xff] %vm51_vm0, %v2919_v31 }
0x1421   :  { %3420 = shalt.err (!%p3417_p3)
}
0x1422   :  { %s3421_s10 = scalar_lea.hbm %s3938_s4, 256 }
0x1423   :  { %p3422_p4 = scmp.ne.s32.totalorder %s3938_s4, %s3421_s10  ;;  %p3425_p5 = scmp.lt.u32.totalorder %s3421_s10, %s3938_s4 }
0x1425   :  { %p3427_p6 = pnand %p3425_p5, %p3422_p4 }
0x1427   :  { %3430 = shalt.err (!%p3427_p6)
}
0x1428   :  { %2937 = dma.vmem_to_hbm [thread:$0]  %s2932_s6, 256, %s3938_s4, [#allocation3], %s3472_s28, %s3472_s28, %s3465_s15  }
0x1429   :  { %3433 = dma.done.wait [#allocation3], 256  }
0x142a   :  { %3434 = vsyncadd [#allocation3], 4294967040 }
0x142b   :  { %3435 = dma.done.wait [#allocation7], 256  }
0x142c   :  { %3436 = vsyncadd [#allocation7], 4294967040 }
0x142d   :  { %2956 = vsyncpa [#allocation3], 1 }
0x142e   :  { %2957 = vsyncpa [#allocation7], 1 }
0x142f   :  { %2958 = vsyncpa [#allocation4], 1 }

</bundles_post_ra>
